<compile_context>
chip_gen: v5e
topology: v5e:2x2
jax: 0.10.0
libtpu: 0.0.40
codegen_flags: <defaults>
</compile_context>

<pallas_src>
import functools
import math

import jax
import jax.numpy as jnp
from jax.experimental import pallas as pl
from jax.experimental.pallas import tpu as pltpu


# ----------------------------------------------------------------------------
# One fused Pallas kernel for the whole forward pass
# ----------------------------------------------------------------------------
def _make_fused_forward(B, T, Cin0, hiddens, kernel_sizes, dilation, eps=1e-5):
    n_layers = len(hiddens)
    D = hiddens[-1]
    in_chans = [Cin0] + list(hiddens[:-1])
    c_pad_max = max([Cin0] + list(hiddens))
    pad_max = max((k - 1) * dilation ** i for i, k in enumerate(kernel_sizes))
    P = max(max(hiddens), T)  # packed-parameter row width

    def kernel(*refs):
        # refs = x, w_flat[0..n_layers-1], param_pack, attn_w, out, xp_scratch
        x_ref = refs[0]
        w_refs = refs[1:1 + n_layers]
        pack_ref = refs[1 + n_layers]            # (2*n_layers+1, P) f32
        aw_ref = refs[2 + n_layers]              # (T, D)           f32
        o_ref = refs[3 + n_layers]               # (B, D)           f32
        xp_ref = refs[4 + n_layers]              # (B, T+pad_max, c_pad_max) scratch

        h = x_ref[...]                           # (B, T, Cin0) f32
        c_in = Cin0
        for i in range(n_layers):
            K = kernel_sizes[i]
            d = dilation ** i
            c_out = hiddens[i]
            pad = (K - 1) * d
            w = w_refs[i][...]                   # (K*c_in, c_out) bf16

            # --- causal pad: zero-init pad rows, write current activations ---
            if pad > 0:
                xp_ref[:, :pad, :c_in] = jnp.zeros((B, pad, c_in), jnp.float32)
            xp_ref[:, pad:pad + T, :c_in] = h

            # --- K per-tap MXU matmuls (bf16 operands, f32 accumulate) -------
            # Tap k reads rows [k*d : k*d+T] of the padded scratch, i.e. the
            # input shifted right by (K-1-k)*d with causal zeros — no lane
            # concat, no zeros+concat per tap.
            acc = jnp.zeros((B * T, c_out), jnp.float32)
            for k in range(K):
                x_k = xp_ref[:, k * d:k * d + T, :c_in]          # (B, T, c_in)
                acc = acc + jnp.dot(
                    x_k.reshape(B * T, c_in).astype(jnp.bfloat16),
                    w[k * c_in:(k + 1) * c_in, :],
                    preferred_element_type=jnp.float32,
                )

            # --- training-mode BatchNorm1d (stats over B*T) + ReLU -----------
            # Conv bias is cancelled exactly by the mean subtraction -> dropped.
            gamma = pack_ref[2 * i:2 * i + 1, :c_out]            # (1, c_out)
            beta = pack_ref[2 * i + 1:2 * i + 2, :c_out]         # (1, c_out)
            mean = jnp.mean(acc, axis=0, keepdims=True)
            var = jnp.mean((acc - mean) ** 2, axis=0, keepdims=True)  # two-pass
            hn = (acc - mean) * jax.lax.rsqrt(var + eps) * gamma + beta
            h = jnp.maximum(hn, 0.0).reshape(B, T, c_out)
            c_in = c_out

        # --- SelfAttention pooling -------------------------------------------
        w_attn = aw_ref[...]                                     # (T, D)
        bias = pack_ref[2 * n_layers:2 * n_layers + 1, :T]       # (1, T)
        s = jnp.sum(h * w_attn[None, :, :], axis=-1) + bias      # (B, T)
        a = jnp.tanh(s)
        o_ref[...] = jnp.sum(a[:, :, None] * h, axis=1)          # (B, D)

    n_inputs = n_layers + 3
    # NOTE: lane-sparse channel dim (c_out = 32) caps VPU/store efficiency at
    # 25%; widening hiddens to 128 (model-level change) would make every
    # elementwise op and the final store lane-dense.
    return pl.pallas_call(
        kernel,
        out_shape=jax.ShapeDtypeStruct((B, D), jnp.float32),
        in_specs=[pl.BlockSpec(memory_space=pltpu.MemorySpace.VMEM)] * n_inputs,
        out_specs=pl.BlockSpec(memory_space=pltpu.MemorySpace.VMEM),
        scratch_shapes=[pltpu.VMEM((B, T + pad_max, c_pad_max), jnp.float32)],
    )


# ----------------------------------------------------------------------------
# Parameter init (mirrors PyTorch Conv1d / BatchNorm1d / SelfAttention defaults)
# ----------------------------------------------------------------------------
def init_params(key, metric_num, hiddens, kernel_sizes, T):
    params = {"layers": []}
    in_c = metric_num
    for out_c, K in zip(hiddens, kernel_sizes):
        key, kw, kb = jax.random.split(key, 3)
        bound = 1.0 / math.sqrt(in_c * K)
        W = jax.random.uniform(kw, (K, in_c, out_c), jnp.float32, -bound, bound)
        bias = jax.random.uniform(kb, (1, out_c), jnp.float32, -bound, bound)
        gamma = jnp.ones((1, out_c), jnp.float32)
        beta = jnp.zeros((1, out_c), jnp.float32)
        params["layers"].append((W, bias, gamma, beta))
        in_c = out_c
    D = hiddens[-1]
    key, ka = jax.random.split(key)
    stdv = math.sqrt(6.0 / (D + 1))                   # glorot on (seq, D, 1)
    params["attn_w"] = jax.random.uniform(ka, (T, D), jnp.float32, -stdv, stdv)
    params["attn_b"] = jnp.zeros((1, T), jnp.float32)
    return params


# ----------------------------------------------------------------------------
# Jitted forward: one fused pallas_call, 5 inputs total
# ----------------------------------------------------------------------------
@functools.partial(jax.jit, static_argnames=("hiddens", "kernel_sizes", "dilation"))
def metric_model_forward(x, params, *, hiddens, kernel_sizes, dilation):
    B, T, M = x.shape
    n_layers = len(hiddens)
    P = max(max(hiddens), T)
    fused = _make_fused_forward(B, T, M, hiddens, kernel_sizes, dilation)

    args = [x.astype(jnp.float32)]
    pack = jnp.zeros((2 * n_layers + 1, P), jnp.float32)
    for i, (W, _bias, gamma, beta) in enumerate(params["layers"]):
        K, c_in, c_out = W.shape
        # conv bias is mathematically cancelled by training-mode BN -> not passed
        args.append(W.reshape(K * c_in, c_out).astype(jnp.bfloat16))
        pack = pack.at[2 * i, :c_out].set(gamma.reshape(-1))
        pack = pack.at[2 * i + 1, :c_out].set(beta.reshape(-1))
    pack = pack.at[2 * n_layers, :T].set(params["attn_b"].reshape(-1))
    args.append(pack)
    args.append(params["attn_w"].astype(jnp.float32))
    return fused(*args)                               # (B, out_dim)


# ----------------------------------------------------------------------------
# Pure-JAX reference.  Conv matmul operands are cast to bf16 (f32 accumulation)
# to mirror the kernel's MXU operand precision; everything else is f32, and the
# conv bias is kept (training-mode BN cancels it).
# ----------------------------------------------------------------------------
def reference_forward(x, params, hiddens, kernel_sizes, dilation, eps=1e-5):
    B, T, M = x.shape
    h = x.astype(jnp.float32)
    in_c = M
    for i, (out_c, K) in enumerate(zip(hiddens, kernel_sizes)):
        W, bias, gamma, beta = params["layers"][i]
        d = dilation ** i
        acc = jnp.zeros((B, T, out_c), jnp.float32)
        for k in range(K):
            shift = (K - 1 - k) * d
            if shift > 0:
                x_s = jnp.concatenate(
                    [jnp.zeros((B, shift, in_c)), h[:, : T - shift, :]], axis=1
                )
            else:
                x_s = h
            acc = acc + jnp.einsum(
                "btc,cd->btd",
                x_s.astype(jnp.bfloat16),
                W[k].astype(jnp.bfloat16),
                preferred_element_type=jnp.float32,
            )
        acc = acc + bias.reshape(1, 1, out_c)
        mean = jnp.mean(acc, axis=(0, 1), keepdims=True)
        var = jnp.mean((acc - mean) ** 2, axis=(0, 1), keepdims=True)
        h = jnp.maximum(
            (acc - mean) / jnp.sqrt(var + eps) * gamma.reshape(1, 1, out_c)
            + beta.reshape(1, 1, out_c),
            0.0,
        )
        in_c = out_c
    w = params["attn_w"]
    b = params["attn_b"]
    s = jnp.tanh(jnp.einsum("btd,td->bt", h, w) + b)
    return jnp.einsum("bt,btd->bd", s, h)


# ----------------------------------------------------------------------------
if __name__ == "__main__":
    # Config mirrors MetricModel.__init__:
    #   model.metric.hiddens = [32, 32], model.metric.kernel_sizes = [3, 3],
    #   model.metric.dropout = 0.0, model.metric.self_attn = True,
    #   model.chunk_length = T = 8, dilation = 2.
    # B grown to 16 so B*T = 128 rows per call (amortizes launch/DMA overhead
    # and fills MXU rows); in production batch many chunks per call.
    B, T, METRIC_NUM = 16, 8, 4
    HIDDENS = (32, 32)
    KERNEL_SIZES = (3, 3)
    DILATION = 2

    root = jax.random.PRNGKey(0)
    kx, kp = jax.random.split(root)
    x = jax.random.normal(kx, (B, T, METRIC_NUM), jnp.float32)
    params = init_params(kp, METRIC_NUM, HIDDENS, KERNEL_SIZES, T)

    out = metric_model_forward(
        x, params, hiddens=HIDDENS, kernel_sizes=KERNEL_SIZES, dilation=DILATION
    )
    out = jax.block_until_ready(out)
    assert out.shape == (B, HIDDENS[-1]), out.shape

    ref = jax.block_until_ready(
        reference_forward(x, params, HIDDENS, KERNEL_SIZES, DILATION)
    )
    assert jnp.allclose(out, ref, rtol=1e-3, atol=1e-3), float(
        jnp.max(jnp.abs(out - ref))
    )

    print("KERNEL_OK")
</pallas_src>

<mosaic_0001>
module attributes {stable_mosaic.version = 11 : i64} {
  func.func @kernel(%arg0: memref<16x8x4xf32, #tpu.memory_space<vmem>>, %arg1: memref<12x32xbf16, #tpu.memory_space<vmem>>, %arg2: memref<96x32xbf16, #tpu.memory_space<vmem>>, %arg3: memref<5x32xf32, #tpu.memory_space<vmem>>, %arg4: memref<8x32xf32, #tpu.memory_space<vmem>>, %arg5: memref<16x32xf32, #tpu.memory_space<vmem>>, %arg6: memref<16x12x32xf32, #tpu.memory_space<vmem>>) attributes {dimension_semantics = [], scalar_prefetch = 0 : i64, scratch_operands = 1 : i64, tpu.core_type = #tpu.core_type<tc>} {
    %c0 = arith.constant 0 : index
    %c0_0 = arith.constant 0 : index
    %c0_1 = arith.constant 0 : index
    %0 = vector.load %arg0[%c0, %c0_0, %c0_1] : memref<16x8x4xf32, #tpu.memory_space<vmem>>, vector<16x8x4xf32>
    %c0_2 = arith.constant 0 : index
    %c0_3 = arith.constant 0 : index
    %1 = vector.load %arg1[%c0_2, %c0_3] : memref<12x32xbf16, #tpu.memory_space<vmem>>, vector<12x32xbf16>
    %cst = arith.constant 0.000000e+00 : f32
    %2 = vector.broadcast %cst : f32 to vector<16x2x4xf32>
    %c0_4 = arith.constant 0 : index
    %c0_5 = arith.constant 0 : index
    %c0_6 = arith.constant 0 : index
    %3 = vector.load %arg6[%c0_4, %c0_5, %c0_6] : memref<16x12x32xf32, #tpu.memory_space<vmem>>, vector<16x2x4xf32>
    tpu.vector_store %arg6[%c0_4, %c0_5, %c0_6], %2 {strides = array<i32>} : memref<16x12x32xf32, #tpu.memory_space<vmem>>, vector<16x2x4xf32>,
    %c0_7 = arith.constant 0 : index
    %c2 = arith.constant 2 : index
    %c0_8 = arith.constant 0 : index
    %4 = vector.load %arg6[%c0_7, %c2, %c0_8] : memref<16x12x32xf32, #tpu.memory_space<vmem>>, vector<16x8x4xf32>
    tpu.vector_store %arg6[%c0_7, %c2, %c0_8], %0 {strides = array<i32>} : memref<16x12x32xf32, #tpu.memory_space<vmem>>, vector<16x8x4xf32>,
    %cst_9 = arith.constant 0.000000e+00 : f32
    %5 = vector.broadcast %cst_9 : f32 to vector<128x32xf32>
    %c0_10 = arith.constant 0 : index
    %c0_11 = arith.constant 0 : index
    %c0_12 = arith.constant 0 : index
    %6 = vector.load %arg6[%c0_10, %c0_11, %c0_12] : memref<16x12x32xf32, #tpu.memory_space<vmem>>, vector<16x8x4xf32>
    %7 = vector.shape_cast %6 : vector<16x8x4xf32> to vector<128x4xf32>
    %8 = arith.truncf %7 : vector<128x4xf32> to vector<128x4xbf16>
    %9 = vector.extract_strided_slice %1 {offsets = [0, 0], sizes = [4, 32], strides = [1, 1]} : vector<12x32xbf16> to vector<4x32xbf16>
    %cst_13 = arith.constant dense<0.000000e+00> : vector<128x32xf32>
    %10 = tpu.matmul %8, %9, %cst_13 {dimension_numbers = #tpu.dot_dimension_numbers<[1], [0], [0], [1], [0, 0, 1, 1], [], []>} : vector<128x4xbf16>, vector<4x32xbf16>, vector<128x32xf32> -> vector<128x32xf32>
    %11 = arith.addf %5, %10 : vector<128x32xf32>
    %c0_14 = arith.constant 0 : index
    %c1 = arith.constant 1 : index
    %c0_15 = arith.constant 0 : index
    %12 = vector.load %arg6[%c0_14, %c1, %c0_15] : memref<16x12x32xf32, #tpu.memory_space<vmem>>, vector<16x8x4xf32>
    %13 = vector.shape_cast %12 : vector<16x8x4xf32> to vector<128x4xf32>
    %14 = arith.truncf %13 : vector<128x4xf32> to vector<128x4xbf16>
    %15 = vector.extract_strided_slice %1 {offsets = [4, 0], sizes = [4, 32], strides = [1, 1]} : vector<12x32xbf16> to vector<4x32xbf16>
    %cst_16 = arith.constant dense<0.000000e+00> : vector<128x32xf32>
    %16 = tpu.matmul %14, %15, %cst_16 {dimension_numbers = #tpu.dot_dimension_numbers<[1], [0], [0], [1], [0, 0, 1, 1], [], []>} : vector<128x4xbf16>, vector<4x32xbf16>, vector<128x32xf32> -> vector<128x32xf32>
    %17 = arith.addf %11, %16 : vector<128x32xf32>
    %c0_17 = arith.constant 0 : index
    %c2_18 = arith.constant 2 : index
    %c0_19 = arith.constant 0 : index
    %18 = vector.load %arg6[%c0_17, %c2_18, %c0_19] : memref<16x12x32xf32, #tpu.memory_space<vmem>>, vector<16x8x4xf32>
    %19 = vector.shape_cast %18 : vector<16x8x4xf32> to vector<128x4xf32>
    %20 = arith.truncf %19 : vector<128x4xf32> to vector<128x4xbf16>
    %21 = vector.extract_strided_slice %1 {offsets = [8, 0], sizes = [4, 32], strides = [1, 1]} : vector<12x32xbf16> to vector<4x32xbf16>
    %cst_20 = arith.constant dense<0.000000e+00> : vector<128x32xf32>
    %22 = tpu.matmul %20, %21, %cst_20 {dimension_numbers = #tpu.dot_dimension_numbers<[1], [0], [0], [1], [0, 0, 1, 1], [], []>} : vector<128x4xbf16>, vector<4x32xbf16>, vector<128x32xf32> -> vector<128x32xf32>
    %23 = arith.addf %17, %22 : vector<128x32xf32>
    %c0_21 = arith.constant 0 : index
    %c0_22 = arith.constant 0 : index
    %24 = vector.load %arg3[%c0_21, %c0_22] : memref<5x32xf32, #tpu.memory_space<vmem>>, vector<1x32xf32>
    %c1_23 = arith.constant 1 : index
    %c0_24 = arith.constant 0 : index
    %25 = vector.load %arg3[%c1_23, %c0_24] : memref<5x32xf32, #tpu.memory_space<vmem>>, vector<1x32xf32>
    %cst_25 = arith.constant dense<0.000000e+00> : vector<32xf32>
    %26 = vector.multi_reduction <add>, %23, %cst_25 [0] : vector<128x32xf32> to vector<32xf32>
    %27 = vector.shape_cast %26 : vector<32xf32> to vector<1x32xf32>
    %cst_26 = arith.constant 1.280000e+02 : f32
    %28 = vector.broadcast %cst_26 : f32 to vector<1x32xf32>
    %29 = arith.divf %27, %28 : vector<1x32xf32>
    %30 = vector.broadcast %29 : vector<1x32xf32> to vector<128x32xf32>
    %31 = arith.subf %23, %30 : vector<128x32xf32>
    %32 = arith.mulf %31, %31 : vector<128x32xf32>
    %cst_27 = arith.constant dense<0.000000e+00> : vector<32xf32>
    %33 = vector.multi_reduction <add>, %32, %cst_27 [0] : vector<128x32xf32> to vector<32xf32>
    %34 = vector.shape_cast %33 : vector<32xf32> to vector<1x32xf32>
    %cst_28 = arith.constant 1.280000e+02 : f32
    %35 = vector.broadcast %cst_28 : f32 to vector<1x32xf32>
    %36 = arith.divf %34, %35 : vector<1x32xf32>
    %37 = vector.broadcast %29 : vector<1x32xf32> to vector<128x32xf32>
    %38 = arith.subf %23, %37 : vector<128x32xf32>
    %cst_29 = arith.constant 9.99999974E-6 : f32
    %39 = vector.broadcast %cst_29 : f32 to vector<1x32xf32>
    %40 = arith.addf %36, %39 : vector<1x32xf32>
    %41 = math.rsqrt %40 : vector<1x32xf32>
    %42 = vector.broadcast %41 : vector<1x32xf32> to vector<128x32xf32>
    %43 = arith.mulf %38, %42 : vector<128x32xf32>
    %44 = vector.broadcast %24 : vector<1x32xf32> to vector<128x32xf32>
    %45 = arith.mulf %43, %44 : vector<128x32xf32>
    %46 = vector.broadcast %25 : vector<1x32xf32> to vector<128x32xf32>
    %47 = arith.addf %45, %46 : vector<128x32xf32>
    %cst_30 = arith.constant 0.000000e+00 : f32
    %48 = vector.broadcast %cst_30 : f32 to vector<128x32xf32>
    %49 = arith.maximumf %47, %48 : vector<128x32xf32>
    %50 = vector.shape_cast %49 : vector<128x32xf32> to vector<16x8x32xf32>
    %c0_31 = arith.constant 0 : index
    %c0_32 = arith.constant 0 : index
    %51 = vector.load %arg2[%c0_31, %c0_32] : memref<96x32xbf16, #tpu.memory_space<vmem>>, vector<96x32xbf16>
    %cst_33 = arith.constant 0.000000e+00 : f32
    %52 = vector.broadcast %cst_33 : f32 to vector<16x4x32xf32>
    %c0_34 = arith.constant 0 : index
    %c0_35 = arith.constant 0 : index
    %c0_36 = arith.constant 0 : index
    %53 = vector.load %arg6[%c0_34, %c0_35, %c0_36] : memref<16x12x32xf32, #tpu.memory_space<vmem>>, vector<16x4x32xf32>
    tpu.vector_store %arg6[%c0_34, %c0_35, %c0_36], %52 {strides = array<i32>} : memref<16x12x32xf32, #tpu.memory_space<vmem>>, vector<16x4x32xf32>,
    %c0_37 = arith.constant 0 : index
    %c4 = arith.constant 4 : index
    %c0_38 = arith.constant 0 : index
    %54 = vector.load %arg6[%c0_37, %c4, %c0_38] : memref<16x12x32xf32, #tpu.memory_space<vmem>>, vector<16x8x32xf32>
    tpu.vector_store %arg6[%c0_37, %c4, %c0_38], %50 {strides = array<i32>} : memref<16x12x32xf32, #tpu.memory_space<vmem>>, vector<16x8x32xf32>,
    %cst_39 = arith.constant 0.000000e+00 : f32
    %55 = vector.broadcast %cst_39 : f32 to vector<128x32xf32>
    %c0_40 = arith.constant 0 : index
    %c0_41 = arith.constant 0 : index
    %c0_42 = arith.constant 0 : index
    %56 = vector.load %arg6[%c0_40, %c0_41, %c0_42] : memref<16x12x32xf32, #tpu.memory_space<vmem>>, vector<16x8x32xf32>
    %57 = vector.shape_cast %56 : vector<16x8x32xf32> to vector<128x32xf32>
    %58 = arith.truncf %57 : vector<128x32xf32> to vector<128x32xbf16>
    %59 = vector.extract_strided_slice %51 {offsets = [0, 0], sizes = [32, 32], strides = [1, 1]} : vector<96x32xbf16> to vector<32x32xbf16>
    %cst_43 = arith.constant dense<0.000000e+00> : vector<128x32xf32>
    %60 = tpu.matmul %58, %59, %cst_43 {dimension_numbers = #tpu.dot_dimension_numbers<[1], [0], [0], [1], [0, 0, 1, 1], [], []>} : vector<128x32xbf16>, vector<32x32xbf16>, vector<128x32xf32> -> vector<128x32xf32>
    %61 = arith.addf %55, %60 : vector<128x32xf32>
    %c0_44 = arith.constant 0 : index
    %c2_45 = arith.constant 2 : index
    %c0_46 = arith.constant 0 : index
    %62 = vector.load %arg6[%c0_44, %c2_45, %c0_46] : memref<16x12x32xf32, #tpu.memory_space<vmem>>, vector<16x8x32xf32>
    %63 = vector.shape_cast %62 : vector<16x8x32xf32> to vector<128x32xf32>
    %64 = arith.truncf %63 : vector<128x32xf32> to vector<128x32xbf16>
    %65 = vector.extract_strided_slice %51 {offsets = [32, 0], sizes = [32, 32], strides = [1, 1]} : vector<96x32xbf16> to vector<32x32xbf16>
    %cst_47 = arith.constant dense<0.000000e+00> : vector<128x32xf32>
    %66 = tpu.matmul %64, %65, %cst_47 {dimension_numbers = #tpu.dot_dimension_numbers<[1], [0], [0], [1], [0, 0, 1, 1], [], []>} : vector<128x32xbf16>, vector<32x32xbf16>, vector<128x32xf32> -> vector<128x32xf32>
    %67 = arith.addf %61, %66 : vector<128x32xf32>
    %c0_48 = arith.constant 0 : index
    %c4_49 = arith.constant 4 : index
    %c0_50 = arith.constant 0 : index
    %68 = vector.load %arg6[%c0_48, %c4_49, %c0_50] : memref<16x12x32xf32, #tpu.memory_space<vmem>>, vector<16x8x32xf32>
    %69 = vector.shape_cast %68 : vector<16x8x32xf32> to vector<128x32xf32>
    %70 = arith.truncf %69 : vector<128x32xf32> to vector<128x32xbf16>
    %71 = vector.extract_strided_slice %51 {offsets = [64, 0], sizes = [32, 32], strides = [1, 1]} : vector<96x32xbf16> to vector<32x32xbf16>
    %cst_51 = arith.constant dense<0.000000e+00> : vector<128x32xf32>
    %72 = tpu.matmul %70, %71, %cst_51 {dimension_numbers = #tpu.dot_dimension_numbers<[1], [0], [0], [1], [0, 0, 1, 1], [], []>} : vector<128x32xbf16>, vector<32x32xbf16>, vector<128x32xf32> -> vector<128x32xf32>
    %73 = arith.addf %67, %72 : vector<128x32xf32>
    %c2_52 = arith.constant 2 : index
    %c0_53 = arith.constant 0 : index
    %74 = vector.load %arg3[%c2_52, %c0_53] : memref<5x32xf32, #tpu.memory_space<vmem>>, vector<1x32xf32>
    %c3 = arith.constant 3 : index
    %c0_54 = arith.constant 0 : index
    %75 = vector.load %arg3[%c3, %c0_54] : memref<5x32xf32, #tpu.memory_space<vmem>>, vector<1x32xf32>
    %cst_55 = arith.constant dense<0.000000e+00> : vector<32xf32>
    %76 = vector.multi_reduction <add>, %73, %cst_55 [0] : vector<128x32xf32> to vector<32xf32>
    %77 = vector.shape_cast %76 : vector<32xf32> to vector<1x32xf32>
    %cst_56 = arith.constant 1.280000e+02 : f32
    %78 = vector.broadcast %cst_56 : f32 to vector<1x32xf32>
    %79 = arith.divf %77, %78 : vector<1x32xf32>
    %80 = vector.broadcast %79 : vector<1x32xf32> to vector<128x32xf32>
    %81 = arith.subf %73, %80 : vector<128x32xf32>
    %82 = arith.mulf %81, %81 : vector<128x32xf32>
    %cst_57 = arith.constant dense<0.000000e+00> : vector<32xf32>
    %83 = vector.multi_reduction <add>, %82, %cst_57 [0] : vector<128x32xf32> to vector<32xf32>
    %84 = vector.shape_cast %83 : vector<32xf32> to vector<1x32xf32>
    %cst_58 = arith.constant 1.280000e+02 : f32
    %85 = vector.broadcast %cst_58 : f32 to vector<1x32xf32>
    %86 = arith.divf %84, %85 : vector<1x32xf32>
    %87 = vector.broadcast %79 : vector<1x32xf32> to vector<128x32xf32>
    %88 = arith.subf %73, %87 : vector<128x32xf32>
    %cst_59 = arith.constant 9.99999974E-6 : f32
    %89 = vector.broadcast %cst_59 : f32 to vector<1x32xf32>
    %90 = arith.addf %86, %89 : vector<1x32xf32>
    %91 = math.rsqrt %90 : vector<1x32xf32>
    %92 = vector.broadcast %91 : vector<1x32xf32> to vector<128x32xf32>
    %93 = arith.mulf %88, %92 : vector<128x32xf32>
    %94 = vector.broadcast %74 : vector<1x32xf32> to vector<128x32xf32>
    %95 = arith.mulf %93, %94 : vector<128x32xf32>
    %96 = vector.broadcast %75 : vector<1x32xf32> to vector<128x32xf32>
    %97 = arith.addf %95, %96 : vector<128x32xf32>
    %cst_60 = arith.constant 0.000000e+00 : f32
    %98 = vector.broadcast %cst_60 : f32 to vector<128x32xf32>
    %99 = arith.maximumf %97, %98 : vector<128x32xf32>
    %100 = vector.shape_cast %99 : vector<128x32xf32> to vector<16x8x32xf32>
    %c0_61 = arith.constant 0 : index
    %c0_62 = arith.constant 0 : index
    %101 = vector.load %arg4[%c0_61, %c0_62] : memref<8x32xf32, #tpu.memory_space<vmem>>, vector<8x32xf32>
    %c4_63 = arith.constant 4 : index
    %c0_64 = arith.constant 0 : index
    %102 = vector.load %arg3[%c4_63, %c0_64] : memref<5x32xf32, #tpu.memory_space<vmem>>, vector<1x8xf32>
    %103 = vector.shape_cast %101 : vector<8x32xf32> to vector<1x8x32xf32>
    %104 = vector.broadcast %103 : vector<1x8x32xf32> to vector<16x8x32xf32>
    %105 = arith.mulf %100, %104 : vector<16x8x32xf32>
    %cst_65 = arith.constant dense<0.000000e+00> : vector<16x8xf32>
    %106 = vector.multi_reduction <add>, %105, %cst_65 [2] : vector<16x8x32xf32> to vector<16x8xf32>
    %107 = vector.broadcast %102 : vector<1x8xf32> to vector<16x8xf32>
    %108 = arith.addf %106, %107 : vector<16x8xf32>
    %109 = math.tanh %108 : vector<16x8xf32>
    %110 = vector.shape_cast %109 : vector<16x8xf32> to vector<16x8x1xf32>
    %111 = vector.broadcast %110 : vector<16x8x1xf32> to vector<16x8x32xf32>
    %112 = arith.mulf %111, %100 : vector<16x8x32xf32>
    %cst_66 = arith.constant dense<0.000000e+00> : vector<16x32xf32>
    %113 = vector.multi_reduction <add>, %112, %cst_66 [1] : vector<16x8x32xf32> to vector<16x32xf32>
    %c0_67 = arith.constant 0 : index
    %c0_68 = arith.constant 0 : index
    %114 = vector.load %arg5[%c0_67, %c0_68] : memref<16x32xf32, #tpu.memory_space<vmem>>, vector<16x32xf32>
    tpu.vector_store %arg5[%c0_67, %c0_68], %113 {strides = array<i32>} : memref<16x32xf32, #tpu.memory_space<vmem>>, vector<16x32xf32>,
    return
  }
}

</mosaic_0001>

<bundles_post_ra>
// kernel: metric_model_forward.1
= control target key start
LH: loop header
LB: loop body
LE: loop exit
PB: predicated region body
PF: predicated region fallthrough
CT: control target
= control target key end

     0   :  { %vm150_vm0 = vcmask 1041408   ;;  %vm40_vm1 = vcmask 25600   ;;  %vm57_vm2 = vcmask 31744   ;;  %v1698_v5 = vmov 0.0   ;;  %s2576_s0 = inlined_call_operand.vmem [shape: f32[16,8,4], index: 0, kind: input, shape index: {}]   ;;  %s2577_s1 = inlined_call_operand.vmem [shape: bf16[12,32], index: 1, kind: input, shape index: {}]   ;;  %s2578_s2 = inlined_call_operand.vmem [shape: bf16[96,32], index: 2, kind: input, shape index: {}]   ;;  %s2579_s3 = inlined_call_operand.vmem [shape: f32[5,32], index: 3, kind: input, shape index: {}]   ;;  %s2580_s4 = inlined_call_operand.vmem [shape: f32[8,32], index: 4, kind: input, shape index: {}]   ;;  %s2581_s5 = inlined_call_operand.hbm [shape: f32[16,32], index: 5, kind: output, shape index: {}]  }
   0x1   :  { %v38_v0 = vld [vmem:[%s2577_s1] sm:$0xf]  ;;  %v31_v4 = vld [vmem:[%s2576_s0 + $0x48] sm:$0xff]  ;;  %49 = vst.msk [vmem:[#allocation2 + $0x80] sm:$0x3] %vm40_vm1, %v1698_v5 }
   0x2   :  { %v123_v1 = vunpack.c.l.b16 %v38_v0  ;;  %v228_v2 = vsel %vm150_vm0, %v38_v0, 0  ;;  %v30_v3 = vld [vmem:[%s2576_s0 + $0x40] sm:$0xff]  ;;  %50 = vst.msk [vmem:[#allocation2 + $0x90] sm:$0x3] %vm40_vm1, %v1698_v5 }
   0x3   :  { %1618 = vmatpush.bf16.msra.mxu3 %v228_v2  ;;  %v39_v6 = vld [vmem:[%s2577_s1 + $0x4] sm:$0x3]  ;;  %237 = vmatpush.bf16.msra.mxu1 %v228_v2  ;;  %66 = vst.msk [vmem:[#allocation2 + $0x82] sm:$0xff] %vm57_vm2, %v30_v3 }
   0x4   :  { %v124_v7 = vpack.c.b16 %v123_v1, %v123_v1  ;;  %67 = vst.msk [vmem:[#allocation2 + $0x92] sm:$0xff] %vm57_vm2, %v31_v4 }
   0x6   :  { %v125_v8 = vrot.slane %v124_v7, 2 }
   0x7   :  { %10 = vsyncpa [#allocation4], 0  ;;  %41 = vst.msk [vmem:[#allocation2] sm:$0x3] %vm40_vm1, %v1698_v5  ;;  %v328_v9 = vsel %vm150_vm0, %v39_v6, 0  ;;  %v32_v17 = vld [vmem:[%s2576_s0 + $0x50] sm:$0xff] }
   0x8   :  { %v152_v10 = vsel %vm150_vm0, %v125_v8, 0  ;;  %42 = vst.msk [vmem:[#allocation2 + $0x10] sm:$0x3] %vm40_vm1, %v1698_v5  ;;  %v33_v18 = vld [vmem:[%s2576_s0 + $0x58] sm:$0xff]  ;;  %v34_v19 = vld [vmem:[%s2576_s0 + $0x60] sm:$0xff]  ;;  %v35_v20 = vld [vmem:[%s2576_s0 + $0x68] sm:$0xff] }
   0x9   :  { %1617 = vmatpush.bf16.msra.mxu2 %v152_v10  ;;  %43 = vst.msk [vmem:[#allocation2 + $0x20] sm:$0x3] %vm40_vm1, %v1698_v5  ;;  %161 = vmatpush.bf16.msra.mxu0 %v152_v10  ;;  %v36_v21 = vld [vmem:[%s2576_s0 + $0x70] sm:$0xff]  ;;  %v37_v22 = vld [vmem:[%s2576_s0 + $0x78] sm:$0xff]  ;;  %v22_v29 = vld [vmem:[%s2576_s0] sm:$0xff]  ;;  %vm602_vm3 = vcmask 257024  }
   0xa   :  { %44 = vst.msk [vmem:[#allocation2 + $0x30] sm:$0x3] %vm40_vm1, %v1698_v5  ;;  %v106_v11 = vld [vmem:[#allocation2 + $0x81] sm:$0xff]  ;;  %v24_v44 = vld [vmem:[%s2576_s0 + $0x10] sm:$0xff]  ;;  %v25_v45 = vld [vmem:[%s2576_s0 + $0x18] sm:$0xff]  ;;  %vm397_vm4 = vcmask 261120  }
   0xb   :  { %45 = vst.msk [vmem:[#allocation2 + $0x40] sm:$0x3] %vm40_vm1, %v1698_v5  ;;  %v82_v12 = vld [vmem:[#allocation2 + $0x80] sm:$0xff]  ;;  %v107_v13 = vld [vmem:[#allocation2 + $0x91] sm:$0xff]  ;;  %v23_v30 = vld [vmem:[%s2576_s0 + $0x8] sm:$0xff]  ;;  %vm1496_vm12 = vcmask 1041409  }
   0xc   :  { %46 = vst.msk [vmem:[#allocation2 + $0x50] sm:$0x3] %vm40_vm1, %v1698_v5  ;;  %v83_v14 = vld [vmem:[#allocation2 + $0x90] sm:$0xff]  ;;  %v118_v15 = vpack.c.bf16 %v107_v13, %v106_v11  ;;  %v26_v60 = vld [vmem:[%s2576_s0 + $0x20] sm:$0xff]  ;;  %v27_v61 = vld [vmem:[%s2576_s0 + $0x28] sm:$0xff]  ;;  %vm1498_vm13 = vcmask 1042434  }
   0xd   :  { %337 = vmatpush.bf16.msrb.mxu2 %v328_v9  ;;  %47 = vst.msk [vmem:[#allocation2 + $0x60] sm:$0x3] %vm40_vm1, %v1698_v5  ;;  %v94_v16 = vpack.c.bf16 %v83_v14, %v82_v12  ;;  %v28_v8 = vld [vmem:[%s2576_s0 + $0x30] sm:$0xff]  ;;  %v29_v9 = vld [vmem:[%s2576_s0 + $0x38] sm:$0xff]  ;;  %vm1500_vm14 = vcmask 1043459   ;;  %vm1502_vm15 = vcmask 1044484  }
   0xe   :  { %48 = vst.msk [vmem:[#allocation2 + $0x70] sm:$0x3] %vm40_vm1, %v1698_v5  ;;  %1543 = vmatmul.msk.bf16.vlgmr.msra.gmra.mxu2 %vm57_vm2, %v118_v15  ;;  %vm1504_vm0 = vcmask 1045509   ;;  %s1527_s1 = sshll.u32 %s2581_s5, 4  ;;  %s1702_s26 = smov 128   ;;  %s1528_s1 = int_to_ptr.hbm [resolvable:$true] %s1527_s1 }
   0xf   :  { %51 = vst.msk [vmem:[#allocation2 + $0xa0] sm:$0x3] %vm40_vm1, %v1698_v5  ;;  %1551 = vmatmul.msk.bf16.vlgmr.msra.gmra.mxu3 %vm57_vm2, %v94_v16  ;;  %s1703_s0 = smov 8  }
  0x10   :  { %52 = vst.msk [vmem:[#allocation2 + $0xb0] sm:$0x3] %vm40_vm1, %v1698_v5 }
  0x11   :  { %53 = vst.msk [vmem:[#allocation2 + $0xc0] sm:$0x3] %vm40_vm1, %v1698_v5 }
  0x12   :  { %54 = vst.msk [vmem:[#allocation2 + $0xd0] sm:$0x3] %vm40_vm1, %v1698_v5 }
  0x13   :  { %55 = vst.msk [vmem:[#allocation2 + $0xe0] sm:$0x3] %vm40_vm1, %v1698_v5 }
  0x14   :  { %56 = vst.msk [vmem:[#allocation2 + $0xf0] sm:$0x3] %vm40_vm1, %v1698_v5  ;;  %vm1506_vm1 = vcmask 1046534  }
  0x15   :  { %68 = vst.msk [vmem:[#allocation2 + $0xa2] sm:$0xff] %vm57_vm2, %v32_v17 }
  0x16   :  { %69 = vst.msk [vmem:[#allocation2 + $0xb2] sm:$0xff] %vm57_vm2, %v33_v18 }
  0x17   :  { %70 = vst.msk [vmem:[#allocation2 + $0xc2] sm:$0xff] %vm57_vm2, %v34_v19 }
  0x18   :  { %71 = vst.msk [vmem:[#allocation2 + $0xd2] sm:$0xff] %vm57_vm2, %v35_v20  ;;  %v287_v20 = vld [vmem:[#allocation2 + $0x82] sm:$0xff] }
  0x19   :  { %72 = vst.msk [vmem:[#allocation2 + $0xe2] sm:$0xff] %vm57_vm2, %v36_v21  ;;  %v288_v21 = vld [vmem:[#allocation2 + $0x92] sm:$0xff] }
  0x1a   :  { %73 = vst.msk [vmem:[#allocation2 + $0xf2] sm:$0xff] %vm57_vm2, %v37_v22 }
  0x1b   :  { %58 = vst.msk [vmem:[#allocation2 + $0x2] sm:$0xff] %vm57_vm2, %v22_v29 }
  0x1c   :  { %v108_v23 = vld [vmem:[#allocation2 + $0xa1] sm:$0xff]  ;;  %59 = vst.msk [vmem:[#allocation2 + $0x12] sm:$0xff] %vm57_vm2, %v23_v30 }
  0x1d   :  { %v84_v24 = vld [vmem:[#allocation2 + $0xa0] sm:$0xff]  ;;  %v109_v25 = vld [vmem:[#allocation2 + $0xb1] sm:$0xff]  ;;  %60 = vst.msk [vmem:[#allocation2 + $0x22] sm:$0xff] %vm57_vm2, %v24_v44 }
  0x1e   :  { %v85_v26 = vld [vmem:[#allocation2 + $0xb0] sm:$0xff]  ;;  %v119_v27 = vpack.c.bf16 %v109_v25, %v108_v23  ;;  %v110_v31 = vld [vmem:[#allocation2 + $0xc1] sm:$0xff]  ;;  %61 = vst.msk [vmem:[#allocation2 + $0x32] sm:$0xff] %vm57_vm2, %v25_v45 }
  0x1f   :  { %v95_v28 = vpack.c.bf16 %v85_v26, %v84_v24  ;;  %v111_v32 = vld [vmem:[#allocation2 + $0xd1] sm:$0xff]  ;;  %v86_v33 = vld [vmem:[#allocation2 + $0xc0] sm:$0xff]  ;;  %62 = vst.msk [vmem:[#allocation2 + $0x42] sm:$0xff] %vm57_vm2, %v26_v60  ;;  %v299_v26 = vpack.c.bf16 %v288_v21, %v287_v20 }
  0x20   :  { %1544 = vmatmul.msk.bf16.gmra.mxu2 %vm57_vm2, %v119_v27  ;;  %v87_v34 = vld [vmem:[#allocation2 + $0xd0] sm:$0xff]  ;;  %v120_v35 = vpack.c.bf16 %v111_v32, %v110_v31  ;;  %v112_v47 = vld [vmem:[#allocation2 + $0xe1] sm:$0xff]  ;;  %63 = vst.msk [vmem:[#allocation2 + $0x52] sm:$0xff] %vm57_vm2, %v27_v61 }
  0x21   :  { %1552 = vmatmul.msk.bf16.gmra.mxu3 %vm57_vm2, %v95_v28  ;;  %v96_v36 = vpack.c.bf16 %v87_v34, %v86_v33  ;;  %v113_v48 = vld [vmem:[#allocation2 + $0xf1] sm:$0xff]  ;;  %v88_v49 = vld [vmem:[#allocation2 + $0xe0] sm:$0xff]  ;;  %64 = vst.msk [vmem:[#allocation2 + $0x62] sm:$0xff] %vm57_vm2, %v28_v8 }
  0x22   :  { %v279_v37 = vld [vmem:[#allocation2 + $0x2] sm:$0xff]  ;;  %v89_v50 = vld [vmem:[#allocation2 + $0xf0] sm:$0xff]  ;;  %v121_v51 = vpack.c.bf16 %v113_v48, %v112_v47  ;;  %65 = vst.msk [vmem:[#allocation2 + $0x72] sm:$0xff] %vm57_vm2, %v29_v9 }
  0x23   :  { %v280_v38 = vld [vmem:[#allocation2 + $0x12] sm:$0xff]  ;;  %v98_v39 = vld [vmem:[#allocation2 + $0x1] sm:$0xff]  ;;  %v97_v52 = vpack.c.bf16 %v89_v50, %v88_v49  ;;  %611 = vst.msk [vmem:[#allocation2 + $0x80] sm:$0xf] %vm602_vm3, %v1698_v5 }
  0x24   :  { %v99_v40 = vld [vmem:[#allocation2 + $0x11] sm:$0xff]  ;;  %v74_v41 = vld [vmem:[#allocation2] sm:$0xff]  ;;  %v295_v63 = vpack.c.bf16 %v280_v38, %v279_v37  ;;  %612 = vst.msk [vmem:[#allocation2 + $0x90] sm:$0xf] %vm602_vm3, %v1698_v5 }
  0x25   :  { %v114_v42 = vpack.c.bf16 %v99_v40, %v98_v39  ;;  %v75_v43 = vld [vmem:[#allocation2 + $0x10] sm:$0xff]  ;;  %603 = vst.msk [vmem:[#allocation2] sm:$0xf] %vm602_vm3, %v1698_v5  ;;  %v281_v53 = vld [vmem:[#allocation2 + $0x22] sm:$0xff] }
  0x26   :  { %v90_v46 = vpack.c.bf16 %v75_v43, %v74_v41  ;;  %604 = vst.msk [vmem:[#allocation2 + $0x10] sm:$0xf] %vm602_vm3, %v1698_v5  ;;  %v282_v54 = vld [vmem:[#allocation2 + $0x32] sm:$0xff]  ;;  %v100_v55 = vld [vmem:[#allocation2 + $0x21] sm:$0xff] }
  0x27   :  { %1539 = vmatmul.msk.bf16.vlgmr.msra.gmra.mxu0 %vm57_vm2, %v114_v42  ;;  %v101_v56 = vld [vmem:[#allocation2 + $0x31] sm:$0xff]  ;;  %v76_v57 = vld [vmem:[#allocation2 + $0x20] sm:$0xff]  ;;  %v296_v11 = vpack.c.bf16 %v282_v54, %v281_v53 }
  0x28   :  { %1547 = vmatmul.msk.bf16.vlgmr.msra.gmra.mxu1 %vm57_vm2, %v90_v46  ;;  %v115_v58 = vpack.c.bf16 %v101_v56, %v100_v55  ;;  %v77_v59 = vld [vmem:[#allocation2 + $0x30] sm:$0xff]  ;;  %605 = vst.msk [vmem:[#allocation2 + $0x20] sm:$0xf] %vm602_vm3, %v1698_v5  ;;  %v283_v0 = vld [vmem:[#allocation2 + $0x42] sm:$0xff] }
  0x29   :  { %v91_v62 = vpack.c.bf16 %v77_v59, %v76_v57  ;;  %606 = vst.msk [vmem:[#allocation2 + $0x30] sm:$0xf] %vm602_vm3, %v1698_v5  ;;  %v284_v1 = vld [vmem:[#allocation2 + $0x52] sm:$0xff]  ;;  %v102_v2 = vld [vmem:[#allocation2 + $0x41] sm:$0xff] }
  0x2a   :  { %v103_v3 = vld [vmem:[#allocation2 + $0x51] sm:$0xff]  ;;  %v78_v4 = vld [vmem:[#allocation2 + $0x40] sm:$0xff]  ;;  %v297_v22 = vpack.c.bf16 %v284_v1, %v283_v0 }
  0x2b   :  { %v116_v6 = vpack.c.bf16 %v103_v3, %v102_v2  ;;  %v79_v7 = vld [vmem:[#allocation2 + $0x50] sm:$0xff]  ;;  %607 = vst.msk [vmem:[#allocation2 + $0x40] sm:$0xf] %vm602_vm3, %v1698_v5  ;;  %v285_v12 = vld [vmem:[#allocation2 + $0x62] sm:$0xff] }
  0x2c   :  { %v92_v10 = vpack.c.bf16 %v79_v7, %v78_v4  ;;  %608 = vst.msk [vmem:[#allocation2 + $0x50] sm:$0xf] %vm602_vm3, %v1698_v5  ;;  %v104_v13 = vld [vmem:[#allocation2 + $0x61] sm:$0xff]  ;;  %v105_v14 = vld [vmem:[#allocation2 + $0x71] sm:$0xff] }
  0x2d   :  { %v80_v15 = vld [vmem:[#allocation2 + $0x60] sm:$0xff]  ;;  %v286_v16 = vld [vmem:[#allocation2 + $0x72] sm:$0xff]  ;;  %v117_v17 = vpack.c.bf16 %v105_v14, %v104_v13 }
  0x2e   :  { %v81_v18 = vld [vmem:[#allocation2 + $0x70] sm:$0xff]  ;;  %609 = vst.msk [vmem:[#allocation2 + $0x60] sm:$0xf] %vm602_vm3, %v1698_v5  ;;  %v298_v23 = vpack.c.bf16 %v286_v16, %v285_v12  ;;  %v289_v24 = vld [vmem:[#allocation2 + $0xa2] sm:$0xff] }
  0x2f   :  { %v93_v19 = vpack.c.bf16 %v81_v18, %v80_v15  ;;  %610 = vst.msk [vmem:[#allocation2 + $0x70] sm:$0xf] %vm602_vm3, %v1698_v5  ;;  %v290_v25 = vld [vmem:[#allocation2 + $0xb2] sm:$0xff]  ;;  %v291_v27 = vld [vmem:[#allocation2 + $0xc2] sm:$0xff] }
  0x30   :  { %1545 = vmatmul.msk.bf16.gmra.mxu2 %vm57_vm2, %v120_v35  ;;  %613 = vst.msk [vmem:[#allocation2 + $0xa0] sm:$0xf] %vm602_vm3, %v1698_v5  ;;  %v292_v28 = vld [vmem:[#allocation2 + $0xd2] sm:$0xff]  ;;  %v300_v31 = vpack.c.bf16 %v290_v25, %v289_v24  ;;  %v293_v32 = vld [vmem:[#allocation2 + $0xe2] sm:$0xff] }
  0x31   :  { %1553 = vmatmul.msk.bf16.gmra.mxu3 %vm57_vm2, %v96_v36  ;;  %614 = vst.msk [vmem:[#allocation2 + $0xb0] sm:$0xf] %vm602_vm3, %v1698_v5  ;;  %v294_v33 = vld [vmem:[#allocation2 + $0xf2] sm:$0xff]  ;;  %v301_v36 = vpack.c.bf16 %v292_v28, %v291_v27 }
  0x32   :  { %615 = vst.msk [vmem:[#allocation2 + $0xc0] sm:$0xf] %vm602_vm3, %v1698_v5  ;;  %v302_v39 = vpack.c.bf16 %v294_v33, %v293_v32 }
  0x33   :  { %616 = vst.msk [vmem:[#allocation2 + $0xd0] sm:$0xf] %vm602_vm3, %v1698_v5 }
  0x34   :  { %617 = vst.msk [vmem:[#allocation2 + $0xe0] sm:$0xf] %vm602_vm3, %v1698_v5 }
  0x35   :  { %618 = vst.msk [vmem:[#allocation2 + $0xf0] sm:$0xf] %vm602_vm3, %v1698_v5 }
  0x37   :  { %1540 = vmatmul.msk.bf16.gmra.mxu0 %vm57_vm2, %v115_v58 }
  0x38   :  { %1548 = vmatmul.msk.bf16.gmra.mxu1 %vm57_vm2, %v91_v62 }
  0x40   :  { %1546 = vmatmul.msk.bf16.gmra.mxu2 %vm57_vm2, %v121_v51 }
  0x41   :  { %1554 = vmatmul.msk.bf16.gmra.mxu3 %vm57_vm2, %v97_v52 }
  0x47   :  { %1541 = vmatmul.msk.bf16.gmra.mxu0 %vm57_vm2, %v116_v6 }
  0x48   :  { %1549 = vmatmul.msk.bf16.gmra.mxu1 %vm57_vm2, %v92_v10 }
  0x50   :  { %1555 = vmatmul.msk.bf16.vlgmr.msrb.gmra.mxu2 %vm57_vm2, %v295_v63 }
  0x57   :  { %1542 = vmatmul.msk.bf16.gmra.mxu0 %vm57_vm2, %v117_v17 }
  0x58   :  { %1550 = vmatmul.msk.bf16.gmra.mxu1 %vm57_vm2, %v93_v19 }
  0x60   :  { %1556 = vmatmul.msk.bf16.gmra.mxu2 %vm57_vm2, %v296_v11 }
  0x70   :  { %1557 = vmatmul.msk.bf16.gmra.mxu2 %vm57_vm2, %v297_v22 }
  0x80   :  { %1558 = vmatmul.msk.bf16.gmra.mxu2 %vm57_vm2, %v298_v23 }
  0x90   :  { %1559 = vmatmul.msk.bf16.gmra.mxu2 %vm57_vm2, %v299_v26 }
  0x91   :  { %v1888_v29 = vpop.f32.mrf.mxu2 }
  0x92   :  { %v259_v17 = vpop.f32.mrf.mxu3 }
  0x99   :  { %v1890_v30 = vpop.f32.mrf.mxu2 }
  0x9a   :  { %v261_v25 = vpop.f32.mrf.mxu3 }
  0xa0   :  { %1560 = vmatmul.msk.bf16.gmra.mxu2 %vm57_vm2, %v300_v31 }
  0xa3   :  { %v1897_v34 = vpop.f32.mrf.mxu2 }
  0xa4   :  { %v163_v40 = vpop.f32.mrf.mxu0 }
  0xa5   :  { %v239_v41 = vpop.f32.mrf.mxu1 }
  0xa6   :  { %v240_v48 = vadd.f32 %v239_v41, %v163_v40 }
  0xab   :  { %v1899_v35 = vpop.f32.mrf.mxu2 }
  0xac   :  { %v165_v5 = vpop.f32.mrf.mxu0 }
  0xad   :  { %v241_v44 = vpop.f32.mrf.mxu1 }
  0xae   :  { %v242_v49 = vadd.f32 %v241_v44, %v165_v5  ;;  %v264_v44 = vpop.f32.mrf.mxu3 }
  0xb0   :  { %1561 = vmatmul.msk.bf16.gmra.mxu2 %vm57_vm2, %v301_v36  ;;  %v260_v36 = vadd.f32 %v259_v17, %v1888_v29 }
  0xb3   :  { %v1902_v37 = vpop.f32.mrf.mxu2 }
  0xb4   :  { %v168_v46 = vpop.f32.mrf.mxu0 }
  0xb5   :  { %v244_v47 = vpop.f32.mrf.mxu1 }
  0xb6   :  { %v245_v58 = vadd.f32 %v244_v47, %v168_v46  ;;  %v266_v29 = vpop.f32.mrf.mxu3 }
  0xbb   :  { %v1904_v38 = vpop.f32.mrf.mxu2 }
  0xbc   :  { %v170_v55 = vpop.f32.mrf.mxu0 }
  0xbd   :  { %v246_v57 = vpop.f32.mrf.mxu1 }
  0xbe   :  { %v247_v63 = vadd.f32 %v246_v57, %v170_v55  ;;  %v265_v55 = vadd.f32 %v264_v44, %v1897_v34 }
  0xc0   :  { %1562 = vmatmul.msk.bf16.gmra.mxu2 %vm57_vm2, %v302_v39  ;;  %vm1508_vm2 = vcmask 1047559  }
  0xc3   :  { %v1907_v42 = vpop.f32.mrf.mxu2 }
  0xc4   :  { %v173_v0 = vpop.f32.mrf.mxu0 }
  0xc5   :  { %v249_v1 = vpop.f32.mrf.mxu1 }
  0xc6   :  { %v250_v7 = vadd.f32 %v249_v1, %v173_v0 }
  0xcb   :  { %v1909_v43 = vpop.f32.mrf.mxu2 }
  0xcc   :  { %v175_v8 = vpop.f32.mrf.mxu0 }
  0xcd   :  { %v251_v10 = vpop.f32.mrf.mxu1 }
  0xce   :  { %v252_v19 = vadd.f32 %v251_v10, %v175_v8 }
  0xd3   :  { %v339_v45 = vpop.f32.mrf.mxu2 }
  0xd4   :  { %v1911_v50 = vadd.f32 %v339_v45, %v240_v48  ;;  %v178_v15 = vpop.f32.mrf.mxu0  ;;  %v262_v48 = vadd.f32 %v261_v25, %v1890_v30 }
  0xd5   :  { %v254_v16 = vpop.f32.mrf.mxu1 }
  0xd6   :  { %v398_v53 = vsel %vm397_vm4, %v1911_v50, 0.0  ;;  %v255_v22 = vadd.f32 %v254_v16, %v178_v15  ;;  %v1699_v15 = vmov 128.0  }
  0xd7   :  { %1634 = vrcp.f32 %v1699_v15 }
  0xdb   :  { %v341_v51 = vpop.f32.mrf.mxu2 }
  0xdc   :  { %v1913_v52 = vadd.f32 %v341_v51, %v242_v49  ;;  %v180_v20 = vpop.f32.mrf.mxu0 }
  0xdd   :  { %v256_v21 = vpop.f32.mrf.mxu1 }
  0xde   :  { %v399_v54 = vsel %vm397_vm4, %v1913_v52, 0.0  ;;  %v257_v24 = vadd.f32 %v256_v21, %v180_v20 }
  0xdf   :  { %v400_v56 = vadd.f32 %v399_v54, %v398_v53 }
  0xe3   :  { %v344_v59 = vpop.f32.mrf.mxu2 }
  0xe4   :  { %v1919_v60 = vadd.f32 %v344_v59, %v245_v58 }
  0xe6   :  { %v401_v61 = vsel %vm397_vm4, %v1919_v60, 0.0 }
  0xe7   :  { %v402_v62 = vadd.f32 %v401_v61, %v400_v56  ;;  %v269_v61 = vpop.f32.mrf.mxu3 }
  0xeb   :  { %v346_v2 = vpop.f32.mrf.mxu2 }
  0xec   :  { %v1923_v3 = vadd.f32 %v346_v2, %v247_v63  ;;  %v270_v2 = vadd.f32 %v269_v61, %v1902_v37 }
  0xee   :  { %v403_v4 = vsel %vm397_vm4, %v1923_v3, 0.0 }
  0xef   :  { %v404_v6 = vadd.f32 %v403_v4, %v402_v62  ;;  %v267_v62 = vadd.f32 %v266_v29, %v1899_v35  ;;  %v271_v4 = vpop.f32.mrf.mxu3 }
  0xf3   :  { %v349_v9 = vpop.f32.mrf.mxu2 }
  0xf4   :  { %v1927_v11 = vadd.f32 %v349_v9, %v250_v7  ;;  %v272_v9 = vadd.f32 %v271_v4, %v1904_v38 }
  0xf6   :  { %v405_v12 = vsel %vm397_vm4, %v1927_v11, 0.0 }
  0xf7   :  { %v406_v13 = vadd.f32 %v405_v12, %v404_v6 }
  0xfb   :  { %v351_v14 = vpop.f32.mrf.mxu2 }
  0xfc   :  { %v1931_v23 = vadd.f32 %v351_v14, %v252_v19  ;;  %v1635_v19 = vpop.eup %1634 }
  0xfd   :  { %v436_v38 = vmul.f32 128.0, %v1635_v19  ;;  %vm440_vm5 = vweird.f32 %v1635_v19 }
  0xfe   :  { %v407_v28 = vsel %vm397_vm4, %v1931_v23, 0.0 }
  0xff   :  { %v408_v33 = vadd.f32 %v407_v28, %v406_v13  ;;  %v274_v13 = vpop.f32.mrf.mxu3  ;;  %v437_v28 = vsub.f32 1.0, %v436_v38 }
 0x100   :  { %v275_v16 = vadd.f32 %v274_v13, %v1907_v42 }
 0x103   :  { %v354_v18 = vpop.f32.mrf.mxu2 }
 0x104   :  { %v1933_v27 = vadd.f32 %v354_v18, %v255_v22 }
 0x106   :  { %v409_v32 = vsel %vm397_vm4, %v1933_v27, 0.0 }
 0x107   :  { %v410_v40 = vadd.f32 %v409_v32, %v408_v33  ;;  %v276_v20 = vpop.f32.mrf.mxu3 }
 0x108   :  { %v277_v22 = vadd.f32 %v276_v20, %v1909_v43 }
 0x10b   :  { %v356_v26 = vpop.f32.mrf.mxu2 }
 0x10c   :  { %v1937_v31 = vadd.f32 %v356_v26, %v257_v24 }
 0x10e   :  { %v411_v39 = vsel %vm397_vm4, %v1937_v31, 0.0 }
 0x10f   :  { %v412_v45 = vadd.f32 %v411_v39, %v410_v40 }
 0x113   :  { %v359_v41 = vpop.f32.mrf.mxu2 }
 0x114   :  { %v1944_v5 = vadd.f32 %v359_v41, %v260_v36  ;;  %v438_v36 = vmul.f32 %v1635_v19, %v437_v28 }
 0x116   :  { %v413_v46 = vsel %vm397_vm4, %v1944_v5, 0.0  ;;  %v439_v40 = vadd.f32 %v1635_v19, %v438_v36 }
 0x117   :  { %v414_v47 = vadd.f32 %v413_v46, %v412_v45 }
 0x118   :  { %v1962_v45 = vsel %vm440_vm5, %v1635_v19, %v439_v40 }
 0x11b   :  { %v361_v49 = vpop.f32.mrf.mxu2 }
 0x11c   :  { %v388_v51 = vadd.f32 %v361_v49, %v262_v48 }
 0x11e   :  { %v415_v53 = vsel %vm397_vm4, %v388_v51, 0.0 }
 0x11f   :  { %v416_v54 = vadd.f32 %v415_v53, %v414_v47 }
 0x123   :  { %v364_v56 = vpop.f32.mrf.mxu2 }
 0x124   :  { %v389_v57 = vadd.f32 %v364_v56, %v265_v55 }
 0x126   :  { %v417_v58 = vsel %vm397_vm4, %v389_v57, 0.0 }
 0x127   :  { %v418_v59 = vadd.f32 %v417_v58, %v416_v54 }
 0x12b   :  { %v366_v63 = vpop.f32.mrf.mxu2 }
 0x12c   :  { %v390_v0 = vadd.f32 %v366_v63, %v267_v62 }
 0x12e   :  { %v419_v30 = vsel %vm397_vm4, %v390_v0, 0.0 }
 0x12f   :  { %v420_v1 = vadd.f32 %v419_v30, %v418_v59 }
 0x133   :  { %v369_v6 = vpop.f32.mrf.mxu2 }
 0x134   :  { %v391_v7 = vadd.f32 %v369_v6, %v270_v2 }
 0x136   :  { %v421_v34 = vsel %vm397_vm4, %v391_v7, 0.0 }
 0x137   :  { %v422_v8 = vadd.f32 %v421_v34, %v420_v1 }
 0x13b   :  { %v371_v10 = vpop.f32.mrf.mxu2 }
 0x13c   :  { %v392_v12 = vadd.f32 %v371_v10, %v272_v9 }
 0x13e   :  { %v423_v35 = vsel %vm397_vm4, %v392_v12, 0.0 }
 0x13f   :  { %v424_v14 = vadd.f32 %v423_v35, %v422_v8 }
 0x143   :  { %v374_v17 = vpop.f32.mrf.mxu2 }
 0x144   :  { %v393_v37 = vadd.f32 %v374_v17, %v275_v16 }
 0x146   :  { %v425_v18 = vsel %vm397_vm4, %v393_v37, 0.0 }
 0x147   :  { %v426_v21 = vadd.f32 %v425_v18, %v424_v14 }
 0x14b   :  { %v376_v24 = vpop.f32.mrf.mxu2 }
 0x14c   :  { %v394_v25 = vadd.f32 %v376_v24, %v277_v22 }
 0x14e   :  { %v427_v26 = vsel %vm397_vm4, %v394_v25, 0.0 }
 0x14f   :  { %v428_v32 = vadd.f32 %v427_v26, %v426_v21 }
 0x151   :  { %v429_v33 = vrot.slane %v428_v32, 4 }
 0x153   :  { %v430_v39 = vadd.f32 %v429_v33, %v428_v32 }
 0x155   :  { %v431_v42 = vrot.slane %v430_v39, 2 }
 0x157   :  { %v432_v41 = vadd.f32 %v431_v42, %v430_v39 }
 0x159   :  { %v433_v44 = vrot.slane %v432_v41, 1 }
 0x15b   :  { %v434_v46 = vadd.f32 %v433_v44, %v432_v41 }
 0x15d   :  { %v442_v43 = vmul.f32 %v1962_v45, %v434_v46 }
 0x15f   :  { %v1966_v47 = vsub.f32 %v1911_v50, %v442_v43  ;;  %v1969_v48 = vsub.f32 %v1913_v52, %v442_v43  ;;  %v1972_v49 = vsub.f32 %v1919_v60, %v442_v43  ;;  %v1975_v53 = vsub.f32 %v1923_v3, %v442_v43 }
 0x160   :  { %v1978_v29 = vsub.f32 %v1927_v11, %v442_v43  ;;  %v1981_v54 = vsub.f32 %v1944_v5, %v442_v43  ;;  %v1983_v55 = vsub.f32 %v388_v51, %v442_v43  ;;  %v1985_v56 = vsub.f32 %v389_v57, %v442_v43 }
 0x161   :  { %v1987_v50 = vsub.f32 %v390_v0, %v442_v43  ;;  %v1989_v52 = vsub.f32 %v391_v7, %v442_v43  ;;  %v1991_v58 = vsub.f32 %v392_v12, %v442_v43  ;;  %v1993_v60 = vsub.f32 %v393_v37, %v442_v43 }
 0x162   :  { %v1995_v3 = vsub.f32 %v394_v25, %v442_v43  ;;  %v459_v11 = vmul.f32 %v1966_v47, %v1966_v47  ;;  %v460_v5 = vmul.f32 %v1969_v48, %v1969_v48  ;;  %v461_v51 = vmul.f32 %v1972_v49, %v1972_v49 }
 0x163   :  { %v2004_v57 = vsub.f32 %v1931_v23, %v442_v43  ;;  %v462_v59 = vmul.f32 %v1975_v53, %v1975_v53  ;;  %v2011_v0 = vsub.f32 %v1933_v27, %v442_v43  ;;  %v463_v30 = vmul.f32 %v1978_v29, %v1978_v29 }
 0x164   :  { %v475_v61 = vsel %vm397_vm4, %v459_v11, 0.0  ;;  %v476_v62 = vsel %vm397_vm4, %v460_v5, 0.0  ;;  %v478_v1 = vsel %vm397_vm4, %v461_v51, 0.0  ;;  %v2017_v23 = vsub.f32 %v1937_v31, %v442_v43 }
 0x165   :  { %v477_v63 = vadd.f32 %v476_v62, %v475_v61  ;;  %v464_v4 = vmul.f32 %v2004_v57, %v2004_v57  ;;  %v480_v6 = vsel %vm397_vm4, %v462_v59, 0.0  ;;  %v465_v34 = vmul.f32 %v2011_v0, %v2011_v0 }
 0x166   :  { %v482_v27 = vsel %vm397_vm4, %v463_v30, 0.0  ;;  %v466_v9 = vmul.f32 %v2017_v23, %v2017_v23  ;;  %v467_v31 = vmul.f32 %v1981_v54, %v1981_v54  ;;  %v468_v14 = vmul.f32 %v1983_v55, %v1983_v55 }
 0x167   :  { %v479_v2 = vadd.f32 %v478_v1, %v477_v63  ;;  %v484_v10 = vsel %vm397_vm4, %v464_v4, 0.0  ;;  %v486_v13 = vsel %vm397_vm4, %v465_v34, 0.0  ;;  %v469_v17 = vmul.f32 %v1985_v56, %v1985_v56 }
 0x168   :  { %v488_v15 = vsel %vm397_vm4, %v466_v9, 0.0  ;;  %v490_v37 = vsel %vm397_vm4, %v467_v31, 0.0  ;;  %v470_v19 = vmul.f32 %v1987_v50, %v1987_v50  ;;  %v492_v20 = vsel %vm397_vm4, %v468_v14, 0.0  ;;  %v1616_v9 = vld [vmem:[%s2578_s2 + $0x28] sm:$0xff]  ;;  %v1629_v14 = vld [vmem:[%s2579_s3] ss:$0 sm:$0xff] }
 0x169   :  { %v481_v7 = vadd.f32 %v480_v6, %v479_v2  ;;  %v471_v22 = vmul.f32 %v1989_v52, %v1989_v52  ;;  %v494_v38 = vsel %vm397_vm4, %v469_v17, 0.0  ;;  %v472_v25 = vmul.f32 %v1991_v58, %v1991_v58  ;;  %919 = vmatpush.bf16.msrb.mxu1 %v1616_v9 }
 0x16a   :  { %v496_v26 = vsel %vm397_vm4, %v470_v19, 0.0  ;;  %v473_v32 = vmul.f32 %v1993_v60, %v1993_v60  ;;  %v474_v39 = vmul.f32 %v1995_v3, %v1995_v3 }
 0x16b   :  { %v483_v8 = vadd.f32 %v482_v27, %v481_v7  ;;  %v498_v33 = vsel %vm397_vm4, %v471_v22, 0.0  ;;  %v500_v42 = vsel %vm397_vm4, %v472_v25, 0.0  ;;  %v1614_v27 = vld [vmem:[%s2578_s2 + $0x18] sm:$0xff] }
 0x16c   :  { %v502_v41 = vsel %vm397_vm4, %v473_v32, 0.0  ;;  %v504_v46 = vsel %vm397_vm4, %v474_v39, 0.0  ;;  %725 = vmatpush.bf16.msrb.mxu3 %v1614_v27 }
 0x16d   :  { %v485_v12 = vadd.f32 %v484_v10, %v483_v8  ;;  %v1612_v8 = vld [vmem:[%s2578_s2 + $0x8] sm:$0xff] }
 0x16e   :  { %810 = vmatpush.bf16.msrb.mxu0 %v1612_v8 }
 0x16f   :  { %v487_v35 = vadd.f32 %v486_v13, %v485_v12  ;;  %v1613_v12 = vld [vmem:[%s2578_s2 + $0x10] sm:$0xff] }
 0x170   :  { %726 = vmatpush.bf16.msrb.mxu3 %v1613_v12 }
 0x171   :  { %v489_v16 = vadd.f32 %v488_v15, %v487_v35  ;;  %v1611_v15 = vld [vmem:[%s2578_s2] sm:$0xff] }
 0x172   :  { %811 = vmatpush.bf16.msrb.mxu0 %v1611_v15 }
 0x173   :  { %v491_v18 = vadd.f32 %v490_v37, %v489_v16 }
 0x175   :  { %v493_v21 = vadd.f32 %v492_v20, %v491_v18 }
 0x177   :  { %v495_v24 = vadd.f32 %v494_v38, %v493_v21 }
 0x179   :  { %v497_v28 = vadd.f32 %v496_v26, %v495_v24 }
 0x17b   :  { %v499_v36 = vadd.f32 %v498_v33, %v497_v28 }
 0x17d   :  { %v501_v40 = vadd.f32 %v500_v42, %v499_v36 }
 0x17f   :  { %v503_v44 = vadd.f32 %v502_v41, %v501_v40 }
 0x181   :  { %v505_v43 = vadd.f32 %v504_v46, %v503_v44 }
 0x183   :  { %v506_v11 = vrot.slane %v505_v43, 4 }
 0x185   :  { %v507_v5 = vadd.f32 %v506_v11, %v505_v43 }
 0x187   :  { %v508_v51 = vrot.slane %v507_v5, 2 }
 0x189   :  { %v509_v59 = vadd.f32 %v508_v51, %v507_v5 }
 0x18b   :  { %v510_v61 = vrot.slane %v509_v59, 1 }
 0x18d   :  { %v511_v62 = vadd.f32 %v510_v61, %v509_v59 }
 0x18f   :  { %v512_v63 = vmul.f32 %v511_v62, %v1962_v45 }
 0x191   :  { %v513_v30 = vadd.f32 1e-05, %v512_v63 }
 0x193   :  { %1636 = vrsqrt.f32 %v513_v30  ;;  %vm520_vm7 = vweird.f32 %v513_v30 }
 0x199   :  { %v1637_v1 = vpop.eup %1636 }
 0x19a   :  { %v515_v2 = vmul.f32 %v1637_v1, %v513_v30  ;;  %vm521_vm6 = vweird.f32 %v1637_v1 }
 0x19b   :  { %vm522_vm8 = vmor %vm520_vm7, %vm521_vm6 }
 0x19c   :  { %v516_v4 = vmul.f32 %v1637_v1, %v515_v2 }
 0x19e   :  { %v517_v6 = vmul.f32 0.5, %v516_v4 }
 0x1a0   :  { %v518_v7 = vsub.f32 1.5, %v517_v6 }
 0x1a2   :  { %v519_v34 = vmul.f32 %v1637_v1, %v518_v7 }
 0x1a4   :  { %v523_v10 = vsel %vm522_vm8, %v1637_v1, %v519_v34 }
 0x1a5   :  { %v524_v31 = vmul.f32 %v523_v10, %v1966_v47  ;;  %v525_v13 = vmul.f32 %v523_v10, %v1969_v48  ;;  %v526_v35 = vmul.f32 %v523_v10, %v1972_v49  ;;  %v527_v16 = vmul.f32 %v523_v10, %v1975_v53  ;;  %v1615_v48 = vld [vmem:[%s2578_s2 + $0x20] sm:$0xff] }
 0x1a6   :  { %v528_v17 = vmul.f32 %v523_v10, %v1978_v29  ;;  %v530_v37 = vmul.f32 %v523_v10, %v2011_v0  ;;  %v531_v47 = vmul.f32 %v523_v10, %v2017_v23  ;;  %v532_v49 = vmul.f32 %v523_v10, %v1981_v54  ;;  %920 = vmatpush.bf16.msrb.mxu1 %v1615_v48 }
 0x1a7   :  { %v533_v18 = vmul.f32 %v523_v10, %v1983_v55  ;;  %v534_v19 = vmul.f32 %v523_v10, %v1985_v56  ;;  %v535_v20 = vmul.f32 %v523_v10, %v1987_v50  ;;  %v536_v53 = vmul.f32 %v523_v10, %v1989_v52  ;;  %v1630_v55 = vld [vmem:[%s2579_s3 + $0x1] ss:$0 sm:$0xff] }
 0x1a8   :  { %v537_v29 = vmul.f32 %v523_v10, %v1991_v58  ;;  %v538_v0 = vmul.f32 %v523_v10, %v1993_v60  ;;  %v539_v23 = vmul.f32 %v523_v10, %v1995_v3  ;;  %v529_v21 = vmul.f32 %v523_v10, %v2004_v57 }
 0x1a9   :  { %v541_v22 = vmul.f32 %v1629_v14, %v524_v31  ;;  %v542_v38 = vmul.f32 %v1629_v14, %v525_v13  ;;  %v543_v54 = vmul.f32 %v1629_v14, %v526_v35  ;;  %v544_v56 = vmul.f32 %v1629_v14, %v527_v16 }
 0x1aa   :  { %v545_v50 = vmul.f32 %v1629_v14, %v528_v17  ;;  %v556_v52 = vmul.f32 %v1629_v14, %v539_v23  ;;  %v546_v58 = vmul.f32 %v1629_v14, %v529_v21  ;;  %v547_v3 = vmul.f32 %v1629_v14, %v530_v37 }
 0x1ab   :  { %v558_v24 = vadd.f32 %v1630_v55, %v541_v22  ;;  %v559_v60 = vadd.f32 %v1630_v55, %v542_v38  ;;  %v560_v25 = vadd.f32 %v1630_v55, %v543_v54  ;;  %v548_v26 = vmul.f32 %v1629_v14, %v531_v47 }
 0x1ac   :  { %v561_v28 = vadd.f32 %v1630_v55, %v544_v56  ;;  %v549_v57 = vmul.f32 %v1629_v14, %v532_v49  ;;  %v550_v32 = vmul.f32 %v1629_v14, %v533_v18  ;;  %v562_v33 = vadd.f32 %v1630_v55, %v545_v50 }
 0x1ad   :  { %v573_v36 = vadd.f32 %v1630_v55, %v556_v52  ;;  %v563_v39 = vadd.f32 %v1630_v55, %v546_v58  ;;  %v574_v42 = vmax.f32 %v558_v24, 0.0  ;;  %v575_v40 = vmax.f32 %v559_v60, 0.0 }
 0x1ae   :  { %v576_v41 = vmax.f32 %v560_v25, 0.0  ;;  %v551_v44 = vmul.f32 %v1629_v14, %v534_v19  ;;  %v564_v46 = vadd.f32 %v1630_v55, %v547_v3  ;;  %v552_v43 = vmul.f32 %v1629_v14, %v535_v20 }
 0x1af   :  { %v565_v11 = vadd.f32 %v1630_v55, %v548_v26  ;;  %v577_v5 = vmax.f32 %v561_v28, 0.0  ;;  %619 = vst.msk [vmem:[#allocation2 + $0x4] sm:$0xff] %vm397_vm4, %v574_v42  ;;  %v553_v51 = vmul.f32 %v1629_v14, %v536_v53  ;;  %v566_v59 = vadd.f32 %v1630_v55, %v549_v57 }
 0x1b0   :  { %v578_v61 = vmax.f32 %v562_v33, 0.0  ;;  %v589_v62 = vmax.f32 %v573_v36, 0.0  ;;  %620 = vst.msk [vmem:[#allocation2 + $0x14] sm:$0xff] %vm397_vm4, %v575_v40  ;;  %v554_v63 = vmul.f32 %v1629_v14, %v537_v29  ;;  %v567_v30 = vadd.f32 %v1630_v55, %v550_v32 }
 0x1b1   :  { %v579_v1 = vmax.f32 %v563_v39, 0.0  ;;  %621 = vst.msk [vmem:[#allocation2 + $0x24] sm:$0xff] %vm397_vm4, %v576_v41  ;;  %v555_v2 = vmul.f32 %v1629_v14, %v538_v0  ;;  %v568_v4 = vadd.f32 %v1630_v55, %v551_v44  ;;  %v580_v6 = vmax.f32 %v564_v46, 0.0 }
 0x1b2   :  { %634 = vst.msk [vmem:[#allocation2 + $0xf4] sm:$0xff] %vm397_vm4, %v589_v62  ;;  %v569_v7 = vadd.f32 %v1630_v55, %v552_v43  ;;  %v581_v34 = vmax.f32 %v565_v11, 0.0  ;;  %v570_v27 = vadd.f32 %v1630_v55, %v553_v51  ;;  %v582_v8 = vmax.f32 %v566_v59, 0.0 }
 0x1b3   :  { %622 = vst.msk [vmem:[#allocation2 + $0x34] sm:$0xff] %vm397_vm4, %v577_v5  ;;  %v571_v9 = vadd.f32 %v1630_v55, %v554_v63  ;;  %v583_v10 = vmax.f32 %v567_v30, 0.0  ;;  %v572_v12 = vadd.f32 %v1630_v55, %v555_v2  ;;  %v584_v31 = vmax.f32 %v568_v4, 0.0 }
 0x1b4   :  { %623 = vst.msk [vmem:[#allocation2 + $0x44] sm:$0xff] %vm397_vm4, %v578_v61  ;;  %v585_v15 = vmax.f32 %v569_v7, 0.0  ;;  %v586_v47 = vmax.f32 %v570_v27, 0.0 }
 0x1b5   :  { %624 = vst.msk [vmem:[#allocation2 + $0x54] sm:$0xff] %vm397_vm4, %v579_v1  ;;  %v587_v19 = vmax.f32 %v571_v9, 0.0  ;;  %v588_v20 = vmax.f32 %v572_v12, 0.0 }
 0x1b6   :  { %625 = vst.msk [vmem:[#allocation2 + $0x64] sm:$0xff] %vm397_vm4, %v580_v6  ;;  %v659_v13 = vld [vmem:[#allocation2 + $0x2] sm:$0xff] }
 0x1b7   :  { %v635_v35 = vld [vmem:[#allocation2] sm:$0xff]  ;;  %626 = vst.msk [vmem:[#allocation2 + $0x74] sm:$0xff] %vm397_vm4, %v581_v34  ;;  %v660_v16 = vld [vmem:[#allocation2 + $0x12] sm:$0xff] }
 0x1b8   :  { %v853_v14 = vld [vmem:[#allocation2 + $0x4] sm:$0xff]  ;;  %v636_v17 = vld [vmem:[#allocation2 + $0x10] sm:$0xff]  ;;  %627 = vst.msk [vmem:[#allocation2 + $0x84] sm:$0xff] %vm397_vm4, %v582_v8  ;;  %v675_v48 = vpack.c.bf16 %v660_v16, %v659_v13 }
 0x1b9   :  { %v854_v37 = vld [vmem:[#allocation2 + $0x14] sm:$0xff]  ;;  %v651_v49 = vpack.c.bf16 %v636_v17, %v635_v35  ;;  %628 = vst.msk [vmem:[#allocation2 + $0x94] sm:$0xff] %vm397_vm4, %v583_v10  ;;  %v661_v53 = vld [vmem:[#allocation2 + $0x22] sm:$0xff] }
 0x1ba   :  { %v869_v18 = vpack.c.bf16 %v854_v37, %v853_v14  ;;  %629 = vst.msk [vmem:[#allocation2 + $0xa4] sm:$0xff] %vm397_vm4, %v584_v31  ;;  %1571 = vmatmul.msk.bf16.vlgmr.msrb.gmra.mxu3 %vm397_vm4, %v675_v48  ;;  %v662_v29 = vld [vmem:[#allocation2 + $0x32] sm:$0xff]  ;;  %v637_v0 = vld [vmem:[#allocation2 + $0x20] sm:$0xff] }
 0x1bb   :  { %1587 = vmatmul.msk.bf16.vlgmr.msrb.gmra.mxu0 %vm397_vm4, %v651_v49  ;;  %630 = vst.msk [vmem:[#allocation2 + $0xb4] sm:$0xff] %vm397_vm4, %v585_v15  ;;  %v638_v23 = vld [vmem:[#allocation2 + $0x30] sm:$0xff]  ;;  %v855_v21 = vld [vmem:[#allocation2 + $0x24] sm:$0xff]  ;;  %v676_v38 = vpack.c.bf16 %v662_v29, %v661_v53 }
 0x1bc   :  { %1603 = vmatmul.msk.bf16.vlgmr.msrb.gmra.mxu1 %vm397_vm4, %v869_v18  ;;  %631 = vst.msk [vmem:[#allocation2 + $0xc4] sm:$0xff] %vm397_vm4, %v586_v47  ;;  %v856_v22 = vld [vmem:[#allocation2 + $0x34] sm:$0xff]  ;;  %v652_v54 = vpack.c.bf16 %v638_v23, %v637_v0  ;;  %v663_v56 = vld [vmem:[#allocation2 + $0x42] sm:$0xff] }
 0x1bd   :  { %632 = vst.msk [vmem:[#allocation2 + $0xd4] sm:$0xff] %vm397_vm4, %v587_v19  ;;  %v870_v55 = vpack.c.bf16 %v856_v22, %v855_v21  ;;  %v664_v50 = vld [vmem:[#allocation2 + $0x52] sm:$0xff]  ;;  %v639_v52 = vld [vmem:[#allocation2 + $0x40] sm:$0xff] }
 0x1be   :  { %633 = vst.msk [vmem:[#allocation2 + $0xe4] sm:$0xff] %vm397_vm4, %v588_v20  ;;  %v640_v58 = vld [vmem:[#allocation2 + $0x50] sm:$0xff]  ;;  %v857_v24 = vld [vmem:[#allocation2 + $0x44] sm:$0xff]  ;;  %v677_v25 = vpack.c.bf16 %v664_v50, %v663_v56 }
 0x1bf   :  { %v858_v60 = vld [vmem:[#allocation2 + $0x54] sm:$0xff]  ;;  %v653_v3 = vpack.c.bf16 %v640_v58, %v639_v52  ;;  %v665_v28 = vld [vmem:[#allocation2 + $0x62] sm:$0xff] }
 0x1c0   :  { %v871_v26 = vpack.c.bf16 %v858_v60, %v857_v24  ;;  %v666_v57 = vld [vmem:[#allocation2 + $0x72] sm:$0xff]  ;;  %v641_v32 = vld [vmem:[#allocation2 + $0x60] sm:$0xff] }
 0x1c1   :  { %v642_v33 = vld [vmem:[#allocation2 + $0x70] sm:$0xff]  ;;  %v859_v36 = vld [vmem:[#allocation2 + $0x64] sm:$0xff]  ;;  %v678_v42 = vpack.c.bf16 %v666_v57, %v665_v28 }
 0x1c2   :  { %v860_v39 = vld [vmem:[#allocation2 + $0x74] sm:$0xff]  ;;  %v654_v40 = vpack.c.bf16 %v642_v33, %v641_v32  ;;  %v667_v44 = vld [vmem:[#allocation2 + $0x82] sm:$0xff] }
 0x1c3   :  { %v872_v41 = vpack.c.bf16 %v860_v39, %v859_v36  ;;  %v668_v46 = vld [vmem:[#allocation2 + $0x92] sm:$0xff]  ;;  %v643_v43 = vld [vmem:[#allocation2 + $0x80] sm:$0xff] }
 0x1c4   :  { %v644_v11 = vld [vmem:[#allocation2 + $0x90] sm:$0xff]  ;;  %v861_v5 = vld [vmem:[#allocation2 + $0x84] sm:$0xff]  ;;  %v679_v59 = vpack.c.bf16 %v668_v46, %v667_v44 }
 0x1c5   :  { %v862_v51 = vld [vmem:[#allocation2 + $0x94] sm:$0xff]  ;;  %v655_v61 = vpack.c.bf16 %v644_v11, %v643_v43  ;;  %v669_v63 = vld [vmem:[#allocation2 + $0xa2] sm:$0xff] }
 0x1c6   :  { %v873_v62 = vpack.c.bf16 %v862_v51, %v861_v5  ;;  %v670_v30 = vld [vmem:[#allocation2 + $0xb2] sm:$0xff]  ;;  %v645_v1 = vld [vmem:[#allocation2 + $0xa0] sm:$0xff] }
 0x1c7   :  { %v646_v2 = vld [vmem:[#allocation2 + $0xb0] sm:$0xff]  ;;  %v863_v4 = vld [vmem:[#allocation2 + $0xa4] sm:$0xff]  ;;  %v680_v7 = vpack.c.bf16 %v670_v30, %v669_v63 }
 0x1c8   :  { %v864_v6 = vld [vmem:[#allocation2 + $0xb4] sm:$0xff]  ;;  %v656_v34 = vpack.c.bf16 %v646_v2, %v645_v1  ;;  %v671_v8 = vld [vmem:[#allocation2 + $0xc2] sm:$0xff] }
 0x1c9   :  { %v874_v27 = vpack.c.bf16 %v864_v6, %v863_v4  ;;  %v672_v9 = vld [vmem:[#allocation2 + $0xd2] sm:$0xff]  ;;  %v647_v10 = vld [vmem:[#allocation2 + $0xc0] sm:$0xff] }
 0x1ca   :  { %1572 = vmatmul.msk.bf16.gmra.mxu3 %vm397_vm4, %v676_v38  ;;  %v648_v12 = vld [vmem:[#allocation2 + $0xd0] sm:$0xff]  ;;  %v865_v31 = vld [vmem:[#allocation2 + $0xc4] sm:$0xff]  ;;  %v681_v35 = vpack.c.bf16 %v672_v9, %v671_v8 }
 0x1cb   :  { %1588 = vmatmul.msk.bf16.gmra.mxu0 %vm397_vm4, %v652_v54  ;;  %v866_v13 = vld [vmem:[#allocation2 + $0xd4] sm:$0xff]  ;;  %v657_v14 = vpack.c.bf16 %v648_v12, %v647_v10  ;;  %v673_v17 = vld [vmem:[#allocation2 + $0xe2] sm:$0xff] }
 0x1cc   :  { %1604 = vmatmul.msk.bf16.gmra.mxu1 %vm397_vm4, %v870_v55  ;;  %v875_v15 = vpack.c.bf16 %v866_v13, %v865_v31  ;;  %v674_v16 = vld [vmem:[#allocation2 + $0xf2] sm:$0xff]  ;;  %v649_v37 = vld [vmem:[#allocation2 + $0xe0] sm:$0xff] }
 0x1cd   :  { %v650_v47 = vld [vmem:[#allocation2 + $0xf0] sm:$0xff]  ;;  %v867_v48 = vld [vmem:[#allocation2 + $0xe4] sm:$0xff]  ;;  %v682_v18 = vpack.c.bf16 %v674_v16, %v673_v17 }
 0x1ce   :  { %v868_v49 = vld [vmem:[#allocation2 + $0xf4] sm:$0xff]  ;;  %v658_v19 = vpack.c.bf16 %v650_v47, %v649_v37 }
 0x1cf   :  { %v876_v20 = vpack.c.bf16 %v868_v49, %v867_v48 }
 0x1da   :  { %1573 = vmatmul.msk.bf16.gmra.mxu3 %vm397_vm4, %v677_v25 }
 0x1db   :  { %1589 = vmatmul.msk.bf16.gmra.mxu0 %vm397_vm4, %v653_v3 }
 0x1dc   :  { %1605 = vmatmul.msk.bf16.gmra.mxu1 %vm397_vm4, %v871_v26 }
 0x1ea   :  { %1574 = vmatmul.msk.bf16.gmra.mxu3 %vm397_vm4, %v678_v42 }
 0x1eb   :  { %1590 = vmatmul.msk.bf16.gmra.mxu0 %vm397_vm4, %v654_v40 }
 0x1ec   :  { %1606 = vmatmul.msk.bf16.gmra.mxu1 %vm397_vm4, %v872_v41 }
 0x1fa   :  { %1575 = vmatmul.msk.bf16.gmra.mxu3 %vm397_vm4, %v679_v59 }
 0x1fb   :  { %1591 = vmatmul.msk.bf16.gmra.mxu0 %vm397_vm4, %v655_v61 }
 0x1fc   :  { %1607 = vmatmul.msk.bf16.gmra.mxu1 %vm397_vm4, %v873_v62 }
 0x20a   :  { %1576 = vmatmul.msk.bf16.gmra.mxu3 %vm397_vm4, %v680_v7 }
 0x20b   :  { %1592 = vmatmul.msk.bf16.gmra.mxu0 %vm397_vm4, %v656_v34 }
 0x20c   :  { %1608 = vmatmul.msk.bf16.gmra.mxu1 %vm397_vm4, %v874_v27 }
 0x21a   :  { %1577 = vmatmul.msk.bf16.gmra.mxu3 %vm397_vm4, %v681_v35 }
 0x21b   :  { %1593 = vmatmul.msk.bf16.gmra.mxu0 %vm397_vm4, %v657_v14 }
 0x21c   :  { %1609 = vmatmul.msk.bf16.gmra.mxu1 %vm397_vm4, %v875_v15 }
 0x22a   :  { %1578 = vmatmul.msk.bf16.gmra.mxu3 %vm397_vm4, %v682_v18 }
 0x22b   :  { %1594 = vmatmul.msk.bf16.gmra.mxu0 %vm397_vm4, %v658_v19 }
 0x22c   :  { %1610 = vmatmul.msk.bf16.gmra.mxu1 %vm397_vm4, %v876_v20 }
 0x238   :  { %v813_v53 = vpop.f32.mrf.mxu0 }
 0x239   :  { %v922_v29 = vpop.f32.mrf.mxu1 }
 0x23d   :  { %v728_v0 = vpop.f32.mrf.mxu3 }
 0x23e   :  { %v814_v23 = vadd.f32 %v813_v53, %v728_v0 }
 0x240   :  { %v815_v21 = vpop.f32.mrf.mxu0  ;;  %v2135_v22 = vadd.f32 %v922_v29, %v814_v23 }
 0x241   :  { %v924_v38 = vpop.f32.mrf.mxu1 }
 0x242   :  { %v980_v58 = vsel %vm397_vm4, %v2135_v22, 0.0 }
 0x245   :  { %v730_v54 = vpop.f32.mrf.mxu3 }
 0x246   :  { %v816_v55 = vadd.f32 %v815_v21, %v730_v54 }
 0x248   :  { %v818_v56 = vpop.f32.mrf.mxu0  ;;  %v2137_v50 = vadd.f32 %v924_v38, %v816_v55 }
 0x249   :  { %v927_v52 = vpop.f32.mrf.mxu1 }
 0x24a   :  { %v981_v24 = vsel %vm397_vm4, %v2137_v50, 0.0 }
 0x24b   :  { %v982_v60 = vadd.f32 %v981_v24, %v980_v58 }
 0x24d   :  { %v733_v25 = vpop.f32.mrf.mxu3 }
 0x24e   :  { %v819_v3 = vadd.f32 %v818_v56, %v733_v25 }
 0x250   :  { %v820_v26 = vpop.f32.mrf.mxu0  ;;  %v2143_v28 = vadd.f32 %v927_v52, %v819_v3 }
 0x251   :  { %v929_v57 = vpop.f32.mrf.mxu1 }
 0x252   :  { %v983_v32 = vsel %vm397_vm4, %v2143_v28, 0.0 }
 0x253   :  { %v984_v33 = vadd.f32 %v983_v32, %v982_v60 }
 0x255   :  { %v735_v36 = vpop.f32.mrf.mxu3 }
 0x256   :  { %v821_v39 = vadd.f32 %v820_v26, %v735_v36 }
 0x258   :  { %v823_v42 = vpop.f32.mrf.mxu0  ;;  %v2147_v40 = vadd.f32 %v929_v57, %v821_v39 }
 0x259   :  { %v932_v41 = vpop.f32.mrf.mxu1 }
 0x25a   :  { %v985_v44 = vsel %vm397_vm4, %v2147_v40, 0.0 }
 0x25b   :  { %v986_v46 = vadd.f32 %v985_v44, %v984_v33 }
 0x25d   :  { %v738_v43 = vpop.f32.mrf.mxu3 }
 0x25e   :  { %v824_v11 = vadd.f32 %v823_v42, %v738_v43 }
 0x260   :  { %v825_v5 = vpop.f32.mrf.mxu0  ;;  %v2151_v51 = vadd.f32 %v932_v41, %v824_v11 }
 0x261   :  { %v934_v59 = vpop.f32.mrf.mxu1 }
 0x262   :  { %v987_v61 = vsel %vm397_vm4, %v2151_v51, 0.0 }
 0x263   :  { %v988_v62 = vadd.f32 %v987_v61, %v986_v46 }
 0x265   :  { %v740_v63 = vpop.f32.mrf.mxu3 }
 0x266   :  { %v826_v47 = vadd.f32 %v825_v5, %v740_v63 }
 0x268   :  { %v828_v30 = vpop.f32.mrf.mxu0  ;;  %v2155_v18 = vadd.f32 %v934_v59, %v826_v47 }
 0x269   :  { %v937_v1 = vpop.f32.mrf.mxu1 }
 0x26a   :  { %v989_v23 = vsel %vm397_vm4, %v2155_v18, 0.0 }
 0x26b   :  { %v990_v58 = vadd.f32 %v989_v23, %v988_v62 }
 0x26d   :  { %v743_v2 = vpop.f32.mrf.mxu3 }
 0x26e   :  { %v829_v49 = vadd.f32 %v828_v30, %v743_v2 }
 0x270   :  { %v830_v4 = vpop.f32.mrf.mxu0  ;;  %v2157_v53 = vadd.f32 %v937_v1, %v829_v49 }
 0x271   :  { %v939_v6 = vpop.f32.mrf.mxu1 }
 0x272   :  { %v991_v55 = vsel %vm397_vm4, %v2157_v53, 0.0 }
 0x273   :  { %v992_v3 = vadd.f32 %v991_v55, %v990_v58 }
 0x275   :  { %v745_v7 = vpop.f32.mrf.mxu3 }
 0x276   :  { %v831_v19 = vadd.f32 %v830_v4, %v745_v7 }
 0x278   :  { %v833_v34 = vpop.f32.mrf.mxu0  ;;  %v2161_v21 = vadd.f32 %v939_v6, %v831_v19 }
 0x279   :  { %v942_v27 = vpop.f32.mrf.mxu1 }
 0x27a   :  { %v993_v24 = vsel %vm397_vm4, %v2161_v21, 0.0 }
 0x27b   :  { %v994_v33 = vadd.f32 %v993_v24, %v992_v3 }
 0x27d   :  { %v748_v8 = vpop.f32.mrf.mxu3 }
 0x27e   :  { %v834_v29 = vadd.f32 %v833_v34, %v748_v8 }
 0x280   :  { %v835_v9 = vpop.f32.mrf.mxu0  ;;  %v2165_v56 = vadd.f32 %v942_v27, %v834_v29 }
 0x281   :  { %v944_v10 = vpop.f32.mrf.mxu1 }
 0x282   :  { %v995_v26 = vsel %vm397_vm4, %v2165_v56, 0.0 }
 0x283   :  { %v996_v44 = vadd.f32 %v995_v26, %v994_v33 }
 0x285   :  { %v750_v12 = vpop.f32.mrf.mxu3 }
 0x286   :  { %v836_v38 = vadd.f32 %v835_v9, %v750_v12 }
 0x288   :  { %v838_v31 = vpop.f32.mrf.mxu0  ;;  %v2169_v60 = vadd.f32 %v944_v10, %v836_v38 }
 0x289   :  { %v947_v13 = vpop.f32.mrf.mxu1 }
 0x28a   :  { %v997_v39 = vsel %vm397_vm4, %v2169_v60, 0.0 }
 0x28b   :  { %v998_v61 = vadd.f32 %v997_v39, %v996_v44 }
 0x28d   :  { %v753_v35 = vpop.f32.mrf.mxu3 }
 0x28e   :  { %v839_v52 = vadd.f32 %v838_v31, %v753_v35 }
 0x290   :  { %v840_v14 = vpop.f32.mrf.mxu0  ;;  %v2173_v57 = vadd.f32 %v947_v13, %v839_v52 }
 0x291   :  { %v949_v15 = vpop.f32.mrf.mxu1 }
 0x292   :  { %v999_v11 = vsel %vm397_vm4, %v2173_v57, 0.0 }
 0x293   :  { %v1000_v30 = vadd.f32 %v999_v11, %v998_v61 }
 0x295   :  { %v755_v16 = vpop.f32.mrf.mxu3 }
 0x296   :  { %v841_v25 = vadd.f32 %v840_v14, %v755_v16 }
 0x298   :  { %v843_v17 = vpop.f32.mrf.mxu0  ;;  %v2177_v42 = vadd.f32 %v949_v15, %v841_v25 }
 0x299   :  { %v952_v37 = vpop.f32.mrf.mxu1 }
 0x29a   :  { %v1001_v62 = vsel %vm397_vm4, %v2177_v42, 0.0 }
 0x29b   :  { %v1002_v4 = vadd.f32 %v1001_v62, %v1000_v30 }
 0x29d   :  { %v758_v48 = vpop.f32.mrf.mxu3 }
 0x29e   :  { %v844_v32 = vadd.f32 %v843_v17, %v758_v48 }
 0x2a0   :  { %v845_v20 = vpop.f32.mrf.mxu0  ;;  %v2181_v5 = vadd.f32 %v952_v37, %v844_v32  ;;  %v1233_v32 = vlaneseq }
 0x2a1   :  { %v954_v0 = vpop.f32.mrf.mxu1 }
 0x2a2   :  { %v1003_v1 = vsel %vm397_vm4, %v2181_v5, 0.0 }
 0x2a3   :  { %v1004_v7 = vadd.f32 %v1003_v1, %v1002_v4  ;;  %v1631_v4 = vld [vmem:[%s2579_s3 + $0x4] ss:$0 sm:$0xff] }
 0x2a5   :  { %v760_v54 = vpop.f32.mrf.mxu3 }
 0x2a6   :  { %v846_v41 = vadd.f32 %v845_v20, %v760_v54 }
 0x2a8   :  { %v848_v36 = vpop.f32.mrf.mxu0  ;;  %v2185_v63 = vadd.f32 %v954_v0, %v846_v41  ;;  %v1234_v41 = vshrl.u32 %v1233_v32, 7 }
 0x2a9   :  { %v957_v46 = vpop.f32.mrf.mxu1 }
 0x2aa   :  { %v1005_v6 = vsel %vm397_vm4, %v2185_v63, 0.0  ;;  %1625 = vset.pattern.permute.xlu1 %v1234_v41 }
 0x2ab   :  { %v1006_v10 = vadd.f32 %v1005_v6, %v1004_v7 }
 0x2ad   :  { %v763_v43 = vpop.f32.mrf.mxu3 }
 0x2ae   :  { %v849_v59 = vadd.f32 %v848_v36, %v763_v43 }
 0x2b0   :  { %v2189_v2 = vadd.f32 %v957_v46, %v849_v59  ;;  %v850_v34 = vpop.f32.mrf.mxu0 }
 0x2b1   :  { %v959_v12 = vpop.f32.mrf.mxu1 }
 0x2b2   :  { %v1007_v8 = vsel %vm397_vm4, %v2189_v2, 0.0  ;;  %1237 = vperm.xlu1 %1625, %v1631_v4  }
 0x2b3   :  { %v1008_v13 = vadd.f32 %v1007_v8, %v1006_v10 }
 0x2b5   :  { %v765_v27 = vpop.f32.mrf.mxu3 }
 0x2b6   :  { %v851_v9 = vadd.f32 %v850_v34, %v765_v27 }
 0x2b8   :  { %v2195_v31 = vadd.f32 %v959_v12, %v851_v9 }
 0x2ba   :  { %v1009_v35 = vsel %vm397_vm4, %v2195_v31, 0.0 }
 0x2bb   :  { %v1010_v14 = vadd.f32 %v1009_v35, %v1008_v13 }
 0x2bd   :  { %v1011_v15 = vrot.slane %v1010_v14, 4 }
 0x2bf   :  { %v1012_v16 = vadd.f32 %v1011_v15, %v1010_v14 }
 0x2c1   :  { %v1013_v17 = vrot.slane %v1012_v16, 2 }
 0x2c3   :  { %v1014_v37 = vadd.f32 %v1013_v17, %v1012_v16 }
 0x2c5   :  { %v1015_v47 = vrot.slane %v1014_v37, 1 }
 0x2c7   :  { %v1016_v48 = vadd.f32 %v1015_v47, %v1014_v37 }
 0x2c9   :  { %v1017_v49 = vmul.f32 %v1016_v48, %v1962_v45 }
 0x2cb   :  { %v2201_v19 = vsub.f32 %v2135_v22, %v1017_v49  ;;  %v2204_v20 = vsub.f32 %v2137_v50, %v1017_v49  ;;  %v2207_v29 = vsub.f32 %v2143_v28, %v1017_v49  ;;  %v2210_v0 = vsub.f32 %v2147_v40, %v1017_v49 }
 0x2cc   :  { %v2213_v23 = vsub.f32 %v2151_v51, %v1017_v49  ;;  %v2222_v50 = vsub.f32 %v2155_v18, %v1017_v49  ;;  %v2229_v52 = vsub.f32 %v2157_v53, %v1017_v49  ;;  %v2235_v18 = vsub.f32 %v2161_v21, %v1017_v49 }
 0x2cd   :  { %v1034_v38 = vmul.f32 %v2201_v19, %v2201_v19  ;;  %v1035_v54 = vmul.f32 %v2204_v20, %v2204_v20  ;;  %v1036_v22 = vmul.f32 %v2207_v29, %v2207_v29  ;;  %v1037_v28 = vmul.f32 %v2210_v0, %v2210_v0 }
 0x2ce   :  { %v1038_v58 = vmul.f32 %v2213_v23, %v2213_v23  ;;  %v1039_v3 = vmul.f32 %v2222_v50, %v2222_v50  ;;  %v2241_v36 = vsub.f32 %v2165_v56, %v1017_v49  ;;  %v1040_v53 = vmul.f32 %v2229_v52, %v2229_v52 }
 0x2cf   :  { %v1050_v40 = vsel %vm397_vm4, %v1034_v38, 0.0  ;;  %v1051_v51 = vsel %vm397_vm4, %v1035_v54, 0.0  ;;  %v1053_v24 = vsel %vm397_vm4, %v1036_v22, 0.0  ;;  %v1055_v26 = vsel %vm397_vm4, %v1037_v28, 0.0 }
 0x2d0   :  { %v1052_v55 = vadd.f32 %v1051_v51, %v1050_v40  ;;  %v1057_v39 = vsel %vm397_vm4, %v1038_v58, 0.0  ;;  %v2247_v21 = vsub.f32 %v2169_v60, %v1017_v49  ;;  %v1041_v46 = vmul.f32 %v2235_v18, %v2235_v18 }
 0x2d1   :  { %v1059_v43 = vsel %vm397_vm4, %v1039_v3, 0.0  ;;  %v2253_v56 = vsub.f32 %v2173_v57, %v1017_v49  ;;  %v1042_v59 = vmul.f32 %v2241_v36, %v2241_v36  ;;  %v1061_v61 = vsel %vm397_vm4, %v1040_v53, 0.0 }
 0x2d2   :  { %v1054_v25 = vadd.f32 %v1053_v24, %v1052_v55  ;;  %v2259_v30 = vsub.f32 %v2177_v42, %v1017_v49  ;;  %v1043_v60 = vmul.f32 %v2247_v21, %v2247_v21  ;;  %v1063_v1 = vsel %vm397_vm4, %v1041_v46, 0.0 }
 0x2d3   :  { %v2268_v6 = vsub.f32 %v2181_v5, %v1017_v49  ;;  %v1044_v7 = vmul.f32 %v2253_v56, %v2253_v56  ;;  %v1065_v34 = vsel %vm397_vm4, %v1042_v59, 0.0  ;;  %v2274_v27 = vsub.f32 %v2185_v63, %v1017_v49 }
 0x2d4   :  { %v1056_v33 = vadd.f32 %v1055_v26, %v1054_v25  ;;  %v1045_v8 = vmul.f32 %v2259_v30, %v2259_v30  ;;  %v1067_v9 = vsel %vm397_vm4, %v1043_v60, 0.0  ;;  %v2280_v12 = vsub.f32 %v2189_v2, %v1017_v49 }
 0x2d5   :  { %v1046_v5 = vmul.f32 %v2268_v6, %v2268_v6  ;;  %v1069_v13 = vsel %vm397_vm4, %v1044_v7, 0.0  ;;  %v2286_v14 = vsub.f32 %v2195_v31, %v1017_v49  ;;  %v1047_v63 = vmul.f32 %v2274_v27, %v2274_v27  ;;  %v2342_v7 = vld [vmem:[%s2580_s4] sm:$0xff]  ;;  %s1701_s4 = smov [#allocation3]  }
 0x2d6   :  { %v1058_v44 = vadd.f32 %v1057_v39, %v1056_v33  ;;  %v1071_v15 = vsel %vm397_vm4, %v1045_v8, 0.0  ;;  %v1048_v17 = vmul.f32 %v2280_v12, %v2280_v12  ;;  %s1525_s23 = sshll.u32 %s1701_s4, 4  ;;  %s1526_s23 = int_to_ptr.vmem [resolvable:$true] %s1525_s23 }
 0x2d7   :  { %v1073_v2 = vsel %vm397_vm4, %v1046_v5, 0.0  ;;  %v1049_v47 = vmul.f32 %v2286_v14, %v2286_v14  ;;  %v1075_v48 = vsel %vm397_vm4, %v1047_v63, 0.0 }
 0x2d8   :  { %v1060_v11 = vadd.f32 %v1059_v43, %v1058_v44  ;;  %v1077_v31 = vsel %vm397_vm4, %v1048_v17, 0.0  ;;  %v2303_v44 = vld [vmem:[%s2579_s3 + $0x2] ss:$0 sm:$0xff]  ;;  %v2312_v43 = vld [vmem:[%s2579_s3 + $0x3] ss:$0 sm:$0xff] }
 0x2d9   :  { %v1079_v54 = vsel %vm397_vm4, %v1049_v47, 0.0 }
 0x2da   :  { %v1062_v62 = vadd.f32 %v1061_v61, %v1060_v11 }
 0x2dc   :  { %v1064_v57 = vadd.f32 %v1063_v1, %v1062_v62 }
 0x2de   :  { %v1066_v42 = vadd.f32 %v1065_v34, %v1064_v57 }
 0x2e0   :  { %v1068_v10 = vadd.f32 %v1067_v9, %v1066_v42 }
 0x2e2   :  { %v1070_v35 = vadd.f32 %v1069_v13, %v1068_v10 }
 0x2e4   :  { %v1072_v16 = vadd.f32 %v1071_v15, %v1070_v35 }
 0x2e6   :  { %v1074_v37 = vadd.f32 %v1073_v2, %v1072_v16 }
 0x2e8   :  { %v1076_v38 = vadd.f32 %v1075_v48, %v1074_v37 }
 0x2ea   :  { %v1078_v49 = vadd.f32 %v1077_v31, %v1076_v38 }
 0x2ec   :  { %v1080_v22 = vadd.f32 %v1079_v54, %v1078_v49 }
 0x2ee   :  { %v1081_v28 = vrot.slane %v1080_v22, 4 }
 0x2f0   :  { %v1082_v40 = vadd.f32 %v1081_v28, %v1080_v22 }
 0x2f2   :  { %v1083_v51 = vrot.slane %v1082_v40, 2 }
 0x2f4   :  { %v1084_v55 = vadd.f32 %v1083_v51, %v1082_v40 }
 0x2f6   :  { %v1085_v58 = vrot.slane %v1084_v55, 1 }
 0x2f8   :  { %v1086_v24 = vadd.f32 %v1085_v58, %v1084_v55 }
 0x2fa   :  { %v1087_v25 = vmul.f32 %v1086_v24, %v1962_v45 }
 0x2fc   :  { %v1088_v3 = vadd.f32 1e-05, %v1087_v25 }
 0x2fe   :  { %1638 = vrsqrt.f32 %v1088_v3  ;;  %vm1095_vm10 = vweird.f32 %v1088_v3 }
 0x304   :  { %v1639_v26 = vpop.eup %1638 }
 0x305   :  { %v1090_v32 = vmul.f32 %v1639_v26, %v1088_v3  ;;  %vm1096_vm9 = vweird.f32 %v1639_v26 }
 0x306   :  { %vm1097_vm11 = vmor %vm1095_vm10, %vm1096_vm9 }
 0x307   :  { %v1091_v33 = vmul.f32 %v1639_v26, %v1090_v32 }
 0x309   :  { %v1092_v53 = vmul.f32 0.5, %v1091_v33 }
 0x30b   :  { %v1093_v39 = vsub.f32 1.5, %v1092_v53 }
 0x30d   :  { %v1094_v41 = vmul.f32 %v1639_v26, %v1093_v39 }
 0x30f   :  { %v2305_v46 = vsel %vm1097_vm11, %v1639_v26, %v1094_v41 }
 0x310   :  { %v1103_v45 = vmul.f32 %v2305_v46, %v2213_v23  ;;  %v1101_v11 = vmul.f32 %v2305_v46, %v2207_v29  ;;  %v1099_v59 = vmul.f32 %v2305_v46, %v2201_v19  ;;  %v1104_v61 = vmul.f32 %v2305_v46, %v2222_v50 }
 0x311   :  { %v1102_v62 = vmul.f32 %v2305_v46, %v2210_v0  ;;  %v1100_v23 = vmul.f32 %v2305_v46, %v2204_v20  ;;  %v1107_v42 = vmul.f32 %v2305_v46, %v2241_v36  ;;  %v1106_v8 = vmul.f32 %v2305_v46, %v2235_v18 }
 0x312   :  { %v1120_v60 = vmul.f32 %v2303_v44, %v1103_v45  ;;  %v1118_v1 = vmul.f32 %v2303_v44, %v1101_v11  ;;  %v1116_v4 = vmul.f32 %v2303_v44, %v1099_v59  ;;  %v1121_v29 = vmul.f32 %v2303_v44, %v1104_v61 }
 0x313   :  { %v1119_v57 = vmul.f32 %v2303_v44, %v1102_v62  ;;  %v1117_v19 = vmul.f32 %v2303_v44, %v1100_v23  ;;  %v1124_v16 = vmul.f32 %v2303_v44, %v1107_v42  ;;  %v1123_v17 = vmul.f32 %v2303_v44, %v1106_v8 }
 0x314   :  { %v2331_v50 = vadd.f32 %v2312_v43, %v1120_v60  ;;  %v2334_v0 = vadd.f32 %v2312_v43, %v1118_v1  ;;  %v2337_v20 = vadd.f32 %v2312_v43, %v1116_v4  ;;  %v2345_v34 = vadd.f32 %v2312_v43, %v1121_v29 }
 0x315   :  { %v2355_v13 = vadd.f32 %v2312_v43, %v1119_v57  ;;  %v2358_v35 = vadd.f32 %v2312_v43, %v1117_v19  ;;  %v1105_v31 = vmul.f32 %v2305_v46, %v2229_v52  ;;  %v2383_v54 = vadd.f32 %v2312_v43, %v1124_v16 }
 0x316   :  { %v1153_v9 = vmax.f32 %v2331_v50, 0.0  ;;  %v1151_v10 = vmax.f32 %v2334_v0, 0.0  ;;  %v1149_v5 = vmax.f32 %v2337_v20, 0.0  ;;  %v1154_v15 = vmax.f32 %v2345_v34, 0.0 }
 0x317   :  { %v1152_v48 = vmax.f32 %v2355_v13, 0.0  ;;  %v1150_v38 = vmax.f32 %v2358_v35, 0.0  ;;  %v2386_v22 = vadd.f32 %v2312_v43, %v1123_v17  ;;  %v1122_v40 = vmul.f32 %v2303_v44, %v1105_v31 }
 0x318   :  { %v1171_v63 = vmul.f32 %v2342_v7, %v1153_v9  ;;  %v1169_v18 = vmul.f32 %v2342_v7, %v1151_v10  ;;  %v1167_v36 = vmul.f32 %v2342_v7, %v1149_v5  ;;  %v1172_v49 = vmul.f32 %v2342_v7, %v1154_v15 }
 0x319   :  { %v1170_v28 = vmul.f32 %v2342_v7, %v1152_v48  ;;  %v1110_v51 = vmul.f32 %v2305_v46, %v2259_v30  ;;  %v1109_v52 = vmul.f32 %v2305_v46, %v2253_v56  ;;  %v1168_v55 = vmul.f32 %v2342_v7, %v1150_v38 }
 0x31a   :  { %v1195_v2 = vsel %vm397_vm4, %v1171_v63, 0.0  ;;  %v1189_v37 = vsel %vm397_vm4, %v1169_v18, 0.0  ;;  %v1183_v47 = vsel %vm397_vm4, %v1167_v36, 0.0  ;;  %v1108_v58 = vmul.f32 %v2305_v46, %v2247_v21 }
 0x31b   :  { %1196 = vadd.xlane.f32.xlu2 %v1195_v2  ;;  %1190 = vadd.xlane.f32.xlu1 %v1189_v37  ;;  %v2402_v24 = vadd.f32 %v2312_v43, %v1122_v40  ;;  %v1157_v25 = vmax.f32 %v2383_v54, 0.0  ;;  %v1156_v3 = vmax.f32 %v2386_v22, 0.0  ;;  %v1198_v26 = vsel %vm397_vm4, %v1172_v49, 0.0 }
 0x31c   :  { %1184 = vadd.xlane.f32.xlu0 %v1183_v47  ;;  %v1192_v30 = vsel %vm397_vm4, %v1170_v28, 0.0  ;;  %v1127_v56 = vmul.f32 %v2303_v44, %v1110_v51  ;;  %v1126_v32 = vmul.f32 %v2303_v44, %v1109_v52  ;;  %v1186_v33 = vsel %vm397_vm4, %v1168_v55, 0.0 }
 0x31d   :  { %v1155_v21 = vmax.f32 %v2402_v24, 0.0  ;;  %v1125_v53 = vmul.f32 %v2303_v44, %v1108_v58  ;;  %v1175_v39 = vmul.f32 %v2342_v7, %v1157_v25  ;;  %v1174_v41 = vmul.f32 %v2342_v7, %v1156_v3 }
 0x31e   :  { %v2420_v45 = vadd.f32 %v2312_v43, %v1127_v56  ;;  %v2423_v11 = vadd.f32 %v2312_v43, %v1126_v32  ;;  %v1113_v59 = vmul.f32 %v2305_v46, %v2280_v12  ;;  %v1112_v61 = vmul.f32 %v2305_v46, %v2274_v27 }
 0x31f   :  { %v1173_v62 = vmul.f32 %v2342_v7, %v1155_v21  ;;  %v2433_v23 = vadd.f32 %v2312_v43, %v1125_v53  ;;  %v1111_v60 = vmul.f32 %v2305_v46, %v2268_v6  ;;  %v1207_v1 = vsel %vm397_vm4, %v1175_v39, 0.0 }
 0x320   :  { %v1204_v4 = vsel %vm397_vm4, %v1174_v41, 0.0  ;;  %v1160_v29 = vmax.f32 %v2420_v45, 0.0  ;;  %v1159_v12 = vmax.f32 %v2423_v11, 0.0  ;;  %v1130_v27 = vmul.f32 %v2303_v44, %v1113_v59 }
 0x321   :  { %v1129_v57 = vmul.f32 %v2303_v44, %v1112_v61  ;;  %v1201_v19 = vsel %vm397_vm4, %v1173_v62, 0.0  ;;  %v1158_v42 = vmax.f32 %v2433_v23, 0.0  ;;  %v1128_v6 = vmul.f32 %v2303_v44, %v1111_v60 }
 0x322   :  { %v1178_v8 = vmul.f32 %v2342_v7, %v1160_v29  ;;  %v1177_v63 = vmul.f32 %v2342_v7, %v1159_v12  ;;  %v2453_v18 = vadd.f32 %v2312_v43, %v1130_v27  ;;  %v1114_v16 = vmul.f32 %v2305_v46, %v2286_v14 }
 0x323   :  { %1199 = vadd.xlane.f32.xlu2 %v1198_v26  ;;  %1193 = vadd.xlane.f32.xlu1 %v1192_v30  ;;  %v2456_v36 = vadd.f32 %v2312_v43, %v1129_v57  ;;  %v1176_v17 = vmul.f32 %v2342_v7, %v1158_v42  ;;  %v2464_v2 = vadd.f32 %v2312_v43, %v1128_v6 }
 0x324   :  { %1187 = vadd.xlane.f32.xlu0 %v1186_v33  ;;  %v1216_v37 = vsel %vm397_vm4, %v1178_v8, 0.0  ;;  %v1213_v47 = vsel %vm397_vm4, %v1177_v63, 0.0  ;;  %v1163_v31 = vmax.f32 %v2453_v18, 0.0  ;;  %v1131_v46 = vmul.f32 %v2303_v44, %v1114_v16  ;;  %v2493_v33 = vpop.permute.xlu1 %1237 }
 0x325   :  { %v1162_v49 = vmax.f32 %v2456_v36, 0.0  ;;  %v1210_v28 = vsel %vm397_vm4, %v1176_v17, 0.0  ;;  %v1161_v14 = vmax.f32 %v2464_v2, 0.0 }
 0x326   :  { %v1181_v40 = vmul.f32 %v2342_v7, %v1163_v31  ;;  %v2483_v55 = vadd.f32 %v2312_v43, %v1131_v46  ;;  %v1700_v43 = vmov 0  }
 0x327   :  { %v1180_v51 = vmul.f32 %v2342_v7, %v1162_v49  ;;  %v1179_v52 = vmul.f32 %v2342_v7, %v1161_v14  ;;  %1626 = vset.pattern.permute.xlu2 %v1700_v43  ;;  %1627 = vset.pattern.permute.xlu0 %v1700_v43 }
 0x328   :  { %v1225_v58 = vsel %vm397_vm4, %v1181_v40, 0.0  ;;  %v1164_v30 = vmax.f32 %v2483_v55, 0.0  ;;  %1628 = vset.pattern.permute.xlu1 %v1700_v43 }
 0x329   :  { %v1222_v44 = vsel %vm397_vm4, %v1180_v51, 0.0  ;;  %v1219_v26 = vsel %vm397_vm4, %v1179_v52, 0.0 }
 0x32a   :  { %v1182_v56 = vmul.f32 %v2342_v7, %v1164_v30 }
 0x32b   :  { %1208 = vadd.xlane.f32.xlu2 %v1207_v1  ;;  %1205 = vadd.xlane.f32.xlu1 %v1204_v4 }
 0x32c   :  { %1202 = vadd.xlane.f32.xlu0 %v1201_v19  ;;  %v1228_v32 = vsel %vm397_vm4, %v1182_v56, 0.0 }
 0x333   :  { %1217 = vadd.xlane.f32.xlu2 %v1216_v37  ;;  %1214 = vadd.xlane.f32.xlu1 %v1213_v47 }
 0x334   :  { %1211 = vadd.xlane.f32.xlu0 %v1210_v28 }
 0x33b   :  { %1226 = vadd.xlane.f32.xlu2 %v1225_v58  ;;  %1223 = vadd.xlane.f32.xlu1 %v1222_v44 }
 0x33c   :  { %1220 = vadd.xlane.f32.xlu0 %v1219_v26 }
 0x344   :  { %1229 = vadd.xlane.f32.xlu0 %v1228_v32 }
 0x38e   :  { %v1197_v53 = vpop.xlane.xlu2 %1196  ;;  %v1191_v39 = vpop.xlane.xlu1 %1190 }
 0x38f   :  { %v1185_v41 = vpop.xlane.xlu0 %1184  ;;  %v1242_v61 = vadd.f32 %v2493_v33, %v1191_v39  ;;  %v1244_v8 = vadd.f32 %v2493_v33, %v1197_v53 }
 0x390   :  { %v1240_v59 = vadd.f32 %v2493_v33, %v1185_v41 }
 0x392   :  { %1640 = vtanh.f32 %v1240_v59 }
 0x393   :  { %1642 = vtanh.f32 %v1242_v61 }
 0x396   :  { %v1200_v62 = vpop.xlane.xlu2 %1199  ;;  %v1194_v60 = vpop.xlane.xlu1 %1193 }
 0x397   :  { %v1243_v7 = vadd.f32 %v2493_v33, %v1194_v60  ;;  %v1188_v1 = vpop.xlane.xlu0 %1187  ;;  %v1245_v57 = vadd.f32 %v2493_v33, %v1200_v62 }
 0x398   :  { %v1241_v4 = vadd.f32 %v2493_v33, %v1188_v1  ;;  %v1641_v27 = vpop.eup %1640 }
 0x399   :  { %1644 = vtanh.f32 %v1243_v7  ;;  %1274 = vperm.xlu2 %1626, %v1641_v27   ;;  %v1643_v6 = vpop.eup %1642 }
 0x39a   :  { %1646 = vtanh.f32 %v1241_v4 }
 0x39b   :  { %1648 = vtanh.f32 %v1245_v57 }
 0x39c   :  { %1650 = vtanh.f32 %v1244_v8 }
 0x39e   :  { %v1206_v19 = vpop.xlane.xlu1 %1205  ;;  %v1209_v17 = vpop.xlane.xlu2 %1208 }
 0x39f   :  { %v1203_v63 = vpop.xlane.xlu0 %1202  ;;  %v1645_v16 = vpop.eup %1644  ;;  %v1248_v47 = vadd.f32 %v2493_v33, %v1209_v17  ;;  %v1247_v62 = vadd.f32 %v2493_v33, %v1206_v19 }
 0x3a0   :  { %v1647_v37 = vpop.eup %1646  ;;  %1289 = vperm.xlu1 %1628, %v1645_v16   ;;  %v1246_v60 = vadd.f32 %v2493_v33, %v1203_v63 }
 0x3a1   :  { %1284 = vperm.xlu2 %1626, %v1643_v6   ;;  %1279 = vperm.xlu0 %1627, %v1647_v37   ;;  %v1649_v51 = vpop.eup %1648  ;;  %1652 = vtanh.f32 %v1248_v47 }
 0x3a2   :  { %v1651_v58 = vpop.eup %1650 }
 0x3a6   :  { %v1215_v28 = vpop.xlane.xlu1 %1214  ;;  %v1218_v44 = vpop.xlane.xlu2 %1217 }
 0x3a7   :  { %v1250_v46 = vadd.f32 %v2493_v33, %v1215_v28  ;;  %v1212_v40 = vpop.xlane.xlu0 %1211  ;;  %v1251_v26 = vadd.f32 %v2493_v33, %v1218_v44  ;;  %v1653_v32 = vpop.eup %1652 }
 0x3a8   :  { %v1249_v52 = vadd.f32 %v2493_v33, %v1212_v40  ;;  %1299 = vperm.xlu1 %1628, %v1649_v51  }
 0x3a9   :  { %1654 = vtanh.f32 %v1250_v46  ;;  %1294 = vperm.xlu2 %1626, %v1651_v58  }
 0x3aa   :  { %1656 = vtanh.f32 %v1249_v52 }
 0x3ab   :  { %1658 = vtanh.f32 %v1251_v26 }
 0x3ae   :  { %v1224_v56 = vpop.xlane.xlu1 %1223  ;;  %v1227_v61 = vpop.xlane.xlu2 %1226 }
 0x3af   :  { %v1253_v43 = vadd.f32 %v2493_v33, %v1224_v56  ;;  %v1221_v53 = vpop.xlane.xlu0 %1220  ;;  %v1655_v39 = vpop.eup %1654  ;;  %v1254_v1 = vadd.f32 %v2493_v33, %v1227_v61 }
 0x3b0   :  { %v1252_v41 = vadd.f32 %v2493_v33, %v1221_v53  ;;  %v1657_v59 = vpop.eup %1656  ;;  %1324 = vperm.xlu0 %1627, %v1655_v39  }
 0x3b1   :  { %1660 = vtanh.f32 %v1253_v43  ;;  %1314 = vperm.xlu2 %1626, %v1653_v32   ;;  %1319 = vperm.xlu1 %1628, %v1657_v59   ;;  %v1659_v7 = vpop.eup %1658 }
 0x3b2   :  { %1662 = vtanh.f32 %v1252_v41 }
 0x3b3   :  { %1664 = vtanh.f32 %v1247_v62 }
 0x3b4   :  { %1666 = vtanh.f32 %v1246_v60 }
 0x3b5   :  { %1668 = vtanh.f32 %v1254_v1 }
 0x3b7   :  { %v1661_v4 = vpop.eup %1660  ;;  %v1230_v57 = vpop.xlane.xlu0 %1229 }
 0x3b8   :  { %v1663_v27 = vpop.eup %1662  ;;  %1339 = vperm.xlu0 %1627, %v1661_v4   ;;  %v1255_v8 = vadd.f32 %v2493_v33, %v1230_v57 }
 0x3b9   :  { %1329 = vperm.xlu2 %1626, %v1659_v7   ;;  %1334 = vperm.xlu1 %1628, %v1663_v27   ;;  %v1665_v6 = vpop.eup %1664 }
 0x3ba   :  { %v1667_v16 = vpop.eup %1666  ;;  %1670 = vtanh.f32 %v1255_v8 }
 0x3bb   :  { %v1669_v17 = vpop.eup %1668 }
 0x3c0   :  { %1309 = vperm.xlu0 %1627, %v1665_v6   ;;  %v1671_v19 = vpop.eup %1670 }
 0x3c1   :  { %1304 = vperm.xlu2 %1626, %v1667_v16   ;;  %1344 = vperm.xlu1 %1628, %v1669_v17  }
 0x3c9   :  { %1349 = vperm.xlu2 %1626, %v1671_v19  }
 0x3f3   :  { %v1275_v63 = vpop.permute.xlu2 %1274 }
 0x3f4   :  { %v1352_v46 = vmul.f32 %v1275_v63, %v1149_v5 }
 0x3f6   :  { %v1368_v40 = vsel %vm397_vm4, %v1352_v46, 0.0 }
 0x3f7   :  { %v1369_v52 = vrot.slane %v1368_v40, 4 }
 0x3f9   :  { %v1370_v43 = vadd.f32 %v1369_v52, %v1368_v40 }
 0x3fb   :  { %v1285_v37 = vpop.permute.xlu2 %1284  ;;  %v1371_v41 = vrot.slane %v1370_v43, 2 }
 0x3fc   :  { %v1354_v33 = vmul.f32 %v1285_v37, %v1151_v10 }
 0x3fd   :  { %v1372_v60 = vadd.f32 %v1371_v41, %v1370_v43 }
 0x3fe   :  { %v1382_v20 = vsel %vm397_vm4, %v1354_v33, 0.0 }
 0x3ff   :  { %v1383_v10 = vrot.slane %v1382_v20, 4  ;;  %v1373_v6 = vrot.slane %v1372_v60, 1 }
 0x401   :  { %v1384_v61 = vadd.f32 %v1383_v10, %v1382_v20  ;;  %v1374_v52 = vadd.f32 %v1373_v6, %v1372_v60 }
 0x403   :  { %v1295_v47 = vpop.permute.xlu2 %1294  ;;  %v1385_v27 = vrot.slane %v1384_v61, 2 }
 0x404   :  { %v1356_v53 = vmul.f32 %v1295_v47, %v1153_v9 }
 0x40b   :  { %v1315_v28 = vpop.permute.xlu2 %1314 }
 0x40c   :  { %v1360_v56 = vmul.f32 %v1315_v28, %v1157_v25  ;;  %v1396_v25 = vsel %vm397_vm4, %v1356_v53, 0.0 }
 0x40d   :  { %v1397_v9 = vrot.slane %v1396_v25, 4 }
 0x40e   :  { %v1424_v0 = vsel %vm397_vm4, %v1360_v56, 0.0 }
 0x40f   :  { %v1425_v35 = vrot.slane %v1424_v0, 4 }
 0x411   :  { %v1426_v7 = vadd.f32 %v1425_v35, %v1424_v0 }
 0x412   :  { %v1290_v51 = vpop.permute.xlu1 %1289 }
 0x413   :  { %v1330_v58 = vpop.permute.xlu2 %1329  ;;  %v1280_v44 = vpop.permute.xlu0 %1279  ;;  %v1427_v16 = vrot.slane %v1426_v7, 2 }
 0x414   :  { %v1353_v26 = vmul.f32 %v1280_v44, %v1150_v38  ;;  %v1355_v38 = vmul.f32 %v1290_v51, %v1152_v48  ;;  %v1363_v50 = vmul.f32 %v1330_v58, %v1160_v29  ;;  %v1398_v29 = vadd.f32 %v1397_v9, %v1396_v25 }
 0x415   :  { %v1428_v23 = vadd.f32 %v1427_v16, %v1426_v7 }
 0x416   :  { %v1375_v32 = vsel %vm397_vm4, %v1353_v26, 0.0  ;;  %v1389_v1 = vsel %vm397_vm4, %v1355_v38, 0.0  ;;  %v1445_v34 = vsel %vm397_vm4, %v1363_v50, 0.0  ;;  %v1399_v33 = vrot.slane %v1398_v29, 2 }
 0x417   :  { %v1376_v5 = vrot.slane %v1375_v32, 4  ;;  %v1390_v8 = vrot.slane %v1389_v1, 4  ;;  %v1446_v47 = vrot.slane %v1445_v34, 4 }
 0x418   :  { %v1400_v10 = vadd.f32 %v1399_v33, %v1398_v29 }
 0x419   :  { %v1377_v54 = vadd.f32 %v1376_v5, %v1375_v32  ;;  %v1391_v40 = vadd.f32 %v1390_v8, %v1389_v1  ;;  %v1447_v43 = vadd.f32 %v1446_v47, %v1445_v34 }
 0x41a   :  { %v1300_v39 = vpop.permute.xlu1 %1299  ;;  %v1401_v2 = vrot.slane %v1400_v10, 1 }
 0x41b   :  { %v1305_v59 = vpop.permute.xlu2 %1304  ;;  %v1357_v62 = vmul.f32 %v1300_v39, %v1154_v15  ;;  %v1378_v4 = vrot.slane %v1377_v54, 2  ;;  %v1392_v5 = vrot.slane %v1391_v40, 2  ;;  %v1429_v39 = vrot.slane %v1428_v23, 1 }
 0x41c   :  { %v1358_v48 = vmul.f32 %v1305_v59, %v1155_v21  ;;  %v1386_v21 = vadd.f32 %v1385_v27, %v1384_v61  ;;  %v1448_v61 = vrot.slane %v1447_v43, 2 }
 0x41d   :  { %v1403_v13 = vsel %vm397_vm4, %v1357_v62, 0.0  ;;  %v1379_v17 = vadd.f32 %v1378_v4, %v1377_v54  ;;  %v1393_v9 = vadd.f32 %v1392_v5, %v1391_v40 }
 0x41e   :  { %v1404_v37 = vrot.slane %v1403_v13, 4  ;;  %v1410_v28 = vsel %vm397_vm4, %v1358_v48, 0.0  ;;  %v1387_v32 = vrot.slane %v1386_v21, 1  ;;  %v1449_v6 = vadd.f32 %v1448_v61, %v1447_v43 }
 0x41f   :  { %v1411_v44 = vrot.slane %v1410_v28, 4 }
 0x420   :  { %v1405_v58 = vadd.f32 %v1404_v37, %v1403_v13  ;;  %v1388_v4 = vadd.f32 %v1387_v32, %v1386_v21  ;;  %v1402_v32 = vadd.f32 %v1401_v2, %v1400_v10 }
 0x421   :  { %v1412_v54 = vadd.f32 %v1411_v44, %v1410_v28 }
 0x422   :  { %v1325_v57 = vpop.permute.xlu0 %1324  ;;  %v1406_v38 = vrot.slane %v1405_v58, 2 }
 0x423   :  { %v1320_v15 = vpop.permute.xlu1 %1319  ;;  %v1362_v45 = vmul.f32 %v1325_v57, %v1159_v12  ;;  %v1350_v63 = vpop.permute.xlu2 %1349  ;;  %v1413_v13 = vrot.slane %v1412_v54, 2  ;;  %v1430_v57 = vadd.f32 %v1429_v39, %v1428_v23 }
 0x424   :  { %v1361_v19 = vmul.f32 %v1320_v15, %v1158_v42  ;;  %v1367_v11 = vmul.f32 %v1350_v63, %v1164_v30  ;;  %v1380_v42 = vrot.slane %v1379_v17, 1 }
 0x425   :  { %v1438_v24 = vsel %vm397_vm4, %v1362_v45, 0.0  ;;  %v1394_v45 = vrot.slane %v1393_v9, 1  ;;  %v1414_v28 = vadd.f32 %v1413_v13, %v1412_v54 }
 0x426   :  { %v1431_v46 = vsel %vm397_vm4, %v1361_v19, 0.0  ;;  %v1439_v12 = vrot.slane %v1438_v24, 4  ;;  %v1473_v0 = vsel %vm397_vm4, %v1367_v11, 0.0  ;;  %v1381_v35 = vadd.f32 %v1380_v42, %v1379_v17 }
 0x427   :  { %v1432_v51 = vrot.slane %v1431_v46, 4  ;;  %v1474_v62 = vrot.slane %v1473_v0, 4  ;;  %v1395_v33 = vadd.f32 %v1394_v45, %v1393_v9  ;;  %v1450_v42 = vrot.slane %v1449_v6, 1 }
 0x428   :  { %v1440_v56 = vadd.f32 %v1439_v12, %v1438_v24  ;;  %v1497_v36 = vsel %vm1496_vm12, %v1381_v35, %v1374_v52 }
 0x429   :  { %v1433_v26 = vadd.f32 %v1432_v51, %v1431_v46  ;;  %v1475_v8 = vadd.f32 %v1474_v62, %v1473_v0  ;;  %v1499_v63 = vsel %vm1498_vm13, %v1388_v4, %v1497_v36 }
 0x42a   :  { %v1340_v20 = vpop.permute.xlu0 %1339  ;;  %v1441_v55 = vrot.slane %v1440_v56, 2  ;;  %v1501_v44 = vsel %vm1500_vm14, %v1395_v33, %v1499_v63 }
 0x42b   :  { %v1434_v53 = vrot.slane %v1433_v26, 2  ;;  %v1335_v30 = vpop.permute.xlu1 %1334  ;;  %v1365_v59 = vmul.f32 %v1340_v20, %v1162_v49  ;;  %v1407_v49 = vadd.f32 %v1406_v38, %v1405_v58  ;;  %v1476_v51 = vrot.slane %v1475_v8, 2 }
 0x42c   :  { %v1364_v41 = vmul.f32 %v1335_v30, %v1161_v14  ;;  %v1442_v7 = vadd.f32 %v1441_v55, %v1440_v56  ;;  %v1451_v30 = vadd.f32 %v1450_v42, %v1449_v6  ;;  %v1503_v39 = vsel %vm1502_vm15, %v1402_v32, %v1501_v44 }
 0x42d   :  { %v1435_v25 = vadd.f32 %v1434_v53, %v1433_v26  ;;  %v1459_v50 = vsel %vm397_vm4, %v1365_v59, 0.0  ;;  %v1408_v47 = vrot.slane %v1407_v49, 1  ;;  %v1415_v26 = vrot.slane %v1414_v28, 1 }
 0x42e   :  { %v1452_v60 = vsel %vm397_vm4, %v1364_v41, 0.0  ;;  %v1460_v27 = vrot.slane %v1459_v50, 4  ;;  %v1443_v29 = vrot.slane %v1442_v7, 1  ;;  %v1477_v43 = vadd.f32 %v1476_v51, %v1475_v8 }
 0x42f   :  { %v1453_v1 = vrot.slane %v1452_v60, 4  ;;  %v1436_v14 = vrot.slane %v1435_v25, 1  ;;  %v1416_v35 = vadd.f32 %v1415_v26, %v1414_v28 }
 0x430   :  { %v1461_v34 = vadd.f32 %v1460_v27, %v1459_v50  ;;  %v1444_v22 = vadd.f32 %v1443_v29, %v1442_v7  ;;  %v1478_v54 = vrot.slane %v1477_v43, 1 }
 0x431   :  { %v1454_v48 = vadd.f32 %v1453_v1, %v1452_v60  ;;  %v1437_v37 = vadd.f32 %v1436_v14, %v1435_v25 }
 0x432   :  { %v1310_v15 = vpop.permute.xlu0 %1309  ;;  %v1462_v24 = vrot.slane %v1461_v34, 2  ;;  %v1479_v1 = vadd.f32 %v1478_v54, %v1477_v43 }
 0x433   :  { %v1455_v16 = vrot.slane %v1454_v48, 2  ;;  %v1345_v17 = vpop.permute.xlu1 %1344  ;;  %v1359_v19 = vmul.f32 %v1310_v15, %v1156_v3  ;;  %v1510_v58 = vsel %vm1496_vm12, %v1437_v37, %v1430_v57 }
 0x434   :  { %v1366_v21 = vmul.f32 %v1345_v17, %v1163_v31  ;;  %v1463_v11 = vadd.f32 %v1462_v24, %v1461_v34  ;;  %v1409_v31 = vadd.f32 %v1408_v47, %v1407_v49  ;;  %v1511_v53 = vsel %vm1498_vm13, %v1444_v22, %v1510_v58 }
 0x435   :  { %v1456_v46 = vadd.f32 %v1455_v16, %v1454_v48  ;;  %v1417_v40 = vsel %vm397_vm4, %v1359_v19, 0.0  ;;  %v1512_v25 = vsel %vm1500_vm14, %v1451_v30, %v1511_v53 }
 0x436   :  { %v1466_v12 = vsel %vm397_vm4, %v1366_v21, 0.0  ;;  %v1418_v52 = vrot.slane %v1417_v40, 4  ;;  %v1464_v20 = vrot.slane %v1463_v11, 1  ;;  %v1505_v59 = vsel %vm1504_vm0, %v1409_v31, %v1503_v39 }
 0x437   :  { %v1457_v3 = vrot.slane %v1456_v46, 1  ;;  %v1467_v23 = vrot.slane %v1466_v12, 4  ;;  %v1507_v9 = vsel %vm1506_vm1, %v1416_v35, %v1505_v59 }
 0x438   :  { %v1419_v18 = vadd.f32 %v1418_v52, %v1417_v40  ;;  %v1465_v10 = vadd.f32 %v1464_v20, %v1463_v11 }
 0x439   :  { %v1468_v56 = vadd.f32 %v1467_v23, %v1466_v12  ;;  %v1458_v0 = vadd.f32 %v1457_v3, %v1456_v46 }
 0x43a   :  { %v1420_v5 = vrot.slane %v1419_v18, 2 }
 0x43b   :  { %v1469_v55 = vrot.slane %v1468_v56, 2  ;;  %v1513_v62 = vsel %vm1502_vm15, %v1458_v0, %v1512_v25 }
 0x43c   :  { %v1421_v41 = vadd.f32 %v1420_v5, %v1419_v18  ;;  %v1514_v4 = vsel %vm1504_vm0, %v1465_v10, %v1513_v62 }
 0x43d   :  { %v1470_v38 = vadd.f32 %v1469_v55, %v1468_v56 }
 0x43e   :  { %v1422_v61 = vrot.slane %v1421_v41, 1 }
 0x43f   :  { %v1471_v60 = vrot.slane %v1470_v38, 1 }
 0x440   :  { %v1423_v50 = vadd.f32 %v1422_v61, %v1421_v41 }
 0x441   :  { %v1472_v7 = vadd.f32 %v1471_v60, %v1470_v38 }
 0x442   :  { %v1509_v2 = vsel %vm1508_vm2, %v1423_v50, %v1507_v9 }
 0x443   :  { %v1515_v14 = vsel %vm1506_vm1, %v1472_v7, %v1514_v4  ;;  %1519 = vst.msk [vmem:[#allocation3] sm:$0xff] %vm397_vm4, %v1509_v2 }
 0x444   :  { %v1516_v27 = vsel %vm1508_vm2, %v1479_v1, %v1515_v14 }
 0x445   :  { %1520 = vst.msk [vmem:[#allocation3 + $0x8] sm:$0xff] %vm397_vm4, %v1516_v27 }
 0x446   :  { %1533 = dma.vmem_to_hbm [thread:$0]  %s1526_s23, 256, %s1528_s1, [#allocation4], %s1702_s26, %s1702_s26, %s1703_s0  }
 0x447   :  { %1696 = dma.done.wait [#allocation4], 256  }
 0x448   :  { %1697 = vsyncadd [#allocation4], 4294967040 }
 0x449   :  { %1538 = vsyncpa [#allocation4], 1 }

</bundles_post_ra>
